<compile_context>
chip_gen: v7x
topology: tpu7x:2x2x1
jax: 0.10.0
libtpu: 0.0.40
codegen_flags: <defaults>
</compile_context>

<pallas_src>
import functools
import math

import jax
import jax.numpy as jnp
from jax.experimental import pallas as pl
from jax.experimental.pallas import tpu as pltpu

EPS = 1e-5
N_BRANCH = 3


# -----------------------------------------------------------------------------
# in-kernel helpers
# -----------------------------------------------------------------------------
def _ln(x, g, b):
    """LayerNorm over the last axis (f32 statistics); g/b broadcast as (1, D)."""
    mu = jnp.mean(x, axis=-1, keepdims=True)
    var = jnp.mean(jnp.square(x - mu), axis=-1, keepdims=True)
    return (x - mu) * jax.lax.rsqrt(var + EPS) * g + b


def _proj(a, w_bf16, bias_f32):
    """a @ w + b with bf16 MXU operands and f32 accumulation."""
    return jnp.dot(a.astype(jnp.bfloat16), w_bf16,
                   preferred_element_type=jnp.float32) + bias_f32


# -----------------------------------------------------------------------------
# fully fused kernel: prep norms + 4 decoder layers + final norm + class head
# grid = (batch_chunks, branch, layer)
# -----------------------------------------------------------------------------
def _fused_kernel(*refs, nhead, lam, n_layers, use_pool):
    if use_pool:
        (img_ref, txt_ref, sh_ref, brn_ref,
         ln_ref, bqkv_ref, wqkv_ref, wo_ref, bff1_ref, wff1_ref, wff2_ref,
         wvp_ref, wop_ref, bp_ref,
         hw_ref, hb_ref,
         out_ref, attn_ref,
         tgt, mem) = refs
    else:
        (img_ref, txt_ref, sh_ref, brn_ref,
         ln_ref, bqkv_ref, wqkv_ref, wo_ref, bff1_ref, wff1_ref, wff2_ref,
         hw_ref, hb_ref,
         out_ref, attn_ref,
         tgt, mem) = refs
        wvp_ref = wop_ref = bp_ref = None

    br = pl.program_id(1)
    l = pl.program_id(2)
    Bb, Q, D = tgt.shape
    S = mem.shape[1]
    hd = D // nhead
    f32 = jnp.float32
    bf16 = jnp.bfloat16

    # ---- layer 0: fused decoder_norm / _1 / _2 prep, kept in VMEM scratch ----
    @pl.when(l == 0)
    def _prep_base():
        sh = sh_ref[...]                              # (2, D): [dn_g; dn_b]
        g0, b0 = sh[0:1], sh[1:2]
        mem[...] = _ln(img_ref[...], g0, b0)          # decoder_norm(image)
        txt0 = _ln(txt_ref[...], g0, b0)              # decoder_norm(text)  (Q, D)
        tgt[...] = jnp.broadcast_to(txt0[None], (Bb, Q, D))

    @pl.when(jnp.logical_and(l == 0, br > 0))
    def _prep_branch():                               # decoder_norm_1 / _2 on top
        brn = brn_ref[0]                              # (2, D)
        gb, bb = brn[0:1], brn[1:2]
        mem[...] = _ln(mem[...], gb, bb)
        tgt[...] = _ln(tgt[...], gb, bb)

    # ---- per-(layer, branch) parameter slabs ---------------------------------
    lnb = ln_ref[0, 0]                                # (6, D)
    n1g, n1b = lnb[0:1], lnb[1:2]
    n2g, n2b = lnb[2:3], lnb[3:4]
    b_o, b_f2 = lnb[4:5], lnb[5:6]
    bqkv = bqkv_ref[0, 0]                             # (1, 3D)
    w_in = wqkv_ref[0, 0]                             # (D, 3D) bf16
    w_out = wo_ref[0, 0]                              # (D, D)  bf16
    w_f1 = wff1_ref[0, 0]                             # (D, FF) bf16
    b_f1 = bff1_ref[0, 0]                             # (1, FF)
    w_f2 = wff2_ref[0, 0]                             # (FF, D) bf16

    x = tgt[...]                                      # (Bb, Q, D) f32
    m = mem[...]                                      # (Bb, S, D) f32

    # ---- pre-norm cross-attention over image memory -------------------------
    x2 = _ln(x, n1g, n1b)
    q = _proj(x2.reshape(Bb * Q, D), w_in[:, 0:D], bqkv[:, 0:D]).reshape(Bb, Q, D)
    kv = _proj(m.reshape(Bb * S, D), w_in[:, D:3 * D], bqkv[:, D:3 * D])   # K,V fused
    k = kv[:, 0:D].reshape(Bb, S, D)
    v = kv[:, D:2 * D].reshape(Bb, S, D)

    scale = 1.0 / math.sqrt(hd)
    head_outs = []
    attn_sum = None
    for h in range(nhead):                            # static loop over heads
        sl = slice(h * hd, (h + 1) * hd)
        qh = q[:, :, sl].astype(bf16)
        kh = k[:, :, sl].astype(bf16)
        vh = v[:, :, sl].astype(bf16)
        s = jnp.einsum('bqd,bkd->bqk', qh, kh,
                       preferred_element_type=f32) * scale
        s = s - jnp.max(s, axis=-1, keepdims=True)
        p = jnp.exp(s)
        p = p / jnp.sum(p, axis=-1, keepdims=True)    # exact softmax (attn map)
        oh = jnp.einsum('bqk,bkd->bqd', p.astype(bf16), vh,
                        preferred_element_type=f32)
        head_outs.append(oh.astype(bf16))
        attn_sum = p if attn_sum is None else attn_sum + p

    # concat heads -> ONE bf16 out-projection matmul
    o_cat = jnp.concatenate(head_outs, axis=-1).reshape(Bb * Q, D)
    attn_out = (jnp.dot(o_cat, w_out, preferred_element_type=f32)
                + b_o).reshape(Bb, Q, D)
    if lam[0] == 1.0:
        x = x + attn_out
    elif lam[0] != 0.0:
        x = x + lam[0] * attn_out

    # ---- lam-weighted attention over pooled memory (single key => weights==1)
    if use_pool:
        pool = jnp.mean(m, axis=1)                    # (Bb, D)
        bp = bp_ref[0, 0]                             # (2, D): [b_vp; b_op]
        vp = _proj(pool, wvp_ref[0, 0], bp[0:1])
        op = _proj(vp, wop_ref[0, 0], bp[1:2])        # out_proj(v_proj(pool))
        x = x + lam[1] * op[:, None, :]

    # ---- feed-forward --------------------------------------------------------
    x2 = _ln(x, n2g, n2b)
    hmid = jnp.maximum(_proj(x2.reshape(Bb * Q, D), w_f1, b_f1), 0.0)
    x = x + _proj(hmid, w_f2, b_f2).reshape(Bb, Q, D)

    tgt[...] = x                                      # carry to next layer step

    # ---- last layer: final decoder norm + class head, write outputs once ----
    @pl.when(l == n_layers - 1)
    def _finalize():
        brn = brn_ref[0]
        feat = _ln(x, brn[0:1], brn[1:2])             # decoder final norm
        C = hw_ref.shape[-1]
        logits = jnp.dot(feat.reshape(Bb * Q, D).astype(bf16), hw_ref[0],
                         preferred_element_type=f32) + hb_ref[0]
        out_ref[0] = logits.reshape(Bb, Q, C)
        attn_ref[0] = attn_sum * (1.0 / nhead)        # head-averaged attn map


# -----------------------------------------------------------------------------
# forward wrapper
# -----------------------------------------------------------------------------
def tqn_model_ensemble_forward(image_features, text_features, params,
                               nhead=4, lam=(1.0, 0.0), batch_block=None):
    """image_features: (B, S, D) f32;  text_features: (Q, D) f32."""
    B, S, D = image_features.shape
    Q = text_features.shape[0]
    assert D % nhead == 0
    Bb = B if batch_block is None else min(int(batch_block), B)
    assert B % Bb == 0, "batch_block must divide the batch size"
    NB = B // Bb                                     # leading parallel axis (v7x: pick even)

    L = params["w_qkv"].shape[0]
    C = params["head_w"].shape[-1]
    lam = tuple(float(v) for v in lam)
    use_pool = lam[1] != 0.0                         # trace-time gate (default lam=[1,0])

    def par_spec(arr):                               # (L, BR, *tail) stacked slab
        tail = tuple(arr.shape[2:])
        return pl.BlockSpec((1, 1) + tail,
                            lambda nb, br, l: (l, br) + (0,) * len(tail))

    def br_spec(arr):                                # (BR, *tail) stacked
        tail = tuple(arr.shape[1:])
        return pl.BlockSpec((1,) + tail,
                            lambda nb, br, l: (br,) + (0,) * len(tail))

    in_arrays = [image_features, text_features,
                 params["shared_norm"], params["branch_norm"]]
    in_specs = [
        pl.BlockSpec((Bb, S, D), lambda nb, br, l: (nb, 0, 0)),
        pl.BlockSpec((Q, D), lambda nb, br, l: (0, 0)),
        pl.BlockSpec((2, D), lambda nb, br, l: (0, 0)),
        br_spec(params["branch_norm"]),
    ]

    layer_names = ["ln_slab", "b_qkv", "w_qkv", "w_o", "b_ff1", "w_ff1", "w_ff2"]
    if use_pool:
        layer_names += ["w_vp", "w_op", "b_pool"]
    for name in layer_names:
        arr = params[name]
        in_arrays.append(arr)
        in_specs.append(par_spec(arr))

    in_arrays += [params["head_w"], params["head_b"]]
    in_specs += [br_spec(params["head_w"]), br_spec(params["head_b"])]

    kernel = functools.partial(_fused_kernel, nhead=int(nhead), lam=lam,
                               n_layers=int(L), use_pool=use_pool)

    logits_br, attn_br = pl.pallas_call(
        kernel,
        out_shape=(jax.ShapeDtypeStruct((N_BRANCH, B, Q, C), jnp.float32),
                   jax.ShapeDtypeStruct((N_BRANCH, B, Q, S), jnp.float32)),
        grid=(NB, N_BRANCH, L),                      # layer axis innermost / sequential
        in_specs=in_specs,
        out_specs=(
            pl.BlockSpec((1, Bb, Q, C), lambda nb, br, l: (br, nb, 0, 0)),
            pl.BlockSpec((1, Bb, Q, S), lambda nb, br, l: (br, nb, 0, 0)),
        ),
        scratch_shapes=[pltpu.VMEM((Bb, Q, D), jnp.float32),   # running tgt
                        pltpu.VMEM((Bb, S, D), jnp.float32)],  # branch-normed memory
        compiler_params=pltpu.CompilerParams(
            dimension_semantics=("parallel", "parallel", "arbitrary"),
            # kept <= ~48 MiB so the same plan fits v7x's 64 MiB VMEM; v6e can raise it.
            vmem_limit_bytes=48 * 1024 * 1024),
    )(*in_arrays)

    out = jnp.mean(logits_br, axis=0)                # ensemble average (tiny, plain jnp)
    return out, attn_br[0]                           # branch-0 head-averaged attention


# -----------------------------------------------------------------------------
# Deterministic synthetic parameters (mirrors _init_weights: normal(0, 0.02)).
# Matmul weights pre-transposed to (Din, Dout), stacked per (layer, branch), bf16.
# -----------------------------------------------------------------------------
def init_model_params(key, D, FF, C, num_layers=4, n_branch=N_BRANCH):
    L, BR = num_layers, n_branch
    ks = jax.random.split(key, 7)

    def nrm(k, shape, dtype=jnp.bfloat16):
        return (0.02 * jax.random.normal(k, shape, jnp.float32)).astype(dtype)

    ones = jnp.ones((1, D), jnp.float32)
    zeros = jnp.zeros((1, D), jnp.float32)
    ln_row = jnp.concatenate([ones, zeros, ones, zeros, zeros, zeros], axis=0)  # (6, D)

    return {
        # decoder_norm [gamma; beta] applied first to image memory & text queries
        "shared_norm": jnp.concatenate([ones, zeros], axis=0),                  # (2, D)
        # per-branch norm: br0=decoder_norm, br1=decoder_norm_1, br2=decoder_norm_2
        # (extra prep norm for br>0 AND the decoder's final norm for every branch)
        "branch_norm": jnp.tile(jnp.concatenate([ones, zeros], 0)[None], (BR, 1, 1)),
        # per-(layer, branch) slabs
        "ln_slab": jnp.tile(ln_row[None, None], (L, BR, 1, 1)),   # n1_g,n1_b,n2_g,n2_b,b_o,b_ff2
        "b_qkv": jnp.zeros((L, BR, 1, 3 * D), jnp.float32),
        "w_qkv": nrm(ks[0], (L, BR, D, 3 * D)),                   # in_proj_weight.T
        "w_o": nrm(ks[1], (L, BR, D, D)),                         # out_proj.weight.T
        "b_ff1": jnp.zeros((L, BR, 1, FF), jnp.float32),
        "w_ff1": nrm(ks[2], (L, BR, D, FF)),
        "w_ff2": nrm(ks[3], (L, BR, FF, D)),
        # pooled-memory attention branch (only DMA'd / used when lam[1] != 0)
        "w_vp": nrm(ks[4], (L, BR, D, D)),                        # V slice of pool in_proj, .T
        "w_op": nrm(ks[5], (L, BR, D, D)),
        "b_pool": jnp.zeros((L, BR, 2, D), jnp.float32),          # [b_vp; b_op]
        # class heads (mlp_head / _1 / _2)
        "head_w": nrm(ks[6], (BR, D, C)),
        "head_b": jnp.zeros((BR, 1, C), jnp.float32),
    }


# -----------------------------------------------------------------------------
if __name__ == "__main__":
    # Small shapes consistent with the module's forward:
    #   image_features: (batch, img_seq, embed_dim);  text_features: (num_queries, embed_dim)
    B, S, Q = 2, 16, 8
    D, FF, C, NHEAD = 32, 64, 1, 4
    LAM = (1.0, 0.0)           # module default lam=[1, 0]

    key = jax.random.PRNGKey(0)
    k_img, k_txt, k_par = jax.random.split(key, 3)
    image_features = jax.random.normal(k_img, (B, S, D), dtype=jnp.float32)
    text_features = jax.random.normal(k_txt, (Q, D), dtype=jnp.float32)
    params = init_model_params(k_par, D, FF, C, num_layers=4)

    fwd = jax.jit(tqn_model_ensemble_forward,
                  static_argnames=("nhead", "lam", "batch_block"))
    out, atten_map = fwd(image_features, text_features, params, nhead=NHEAD, lam=LAM)
    out = jax.block_until_ready(out)
    atten_map = jax.block_until_ready(atten_map)
    assert out.shape == (B, Q, C), out.shape
    assert atten_map.shape == (B, Q, S), atten_map.shape
    print("KERNEL_OK")
</pallas_src>

<mosaic_0001>
module attributes {stable_mosaic.version = 11 : i64} {
  func.func @_fused_kernel(%arg0: i32, %arg1: i32, %arg2: i32, %arg3: memref<2x16x32xf32, #tpu.memory_space<vmem>>, %arg4: memref<8x32xf32, #tpu.memory_space<vmem>>, %arg5: memref<2x32xf32, #tpu.memory_space<vmem>>, %arg6: memref<1x2x32xf32, #tpu.memory_space<vmem>>, %arg7: memref<1x1x6x32xf32, #tpu.memory_space<vmem>>, %arg8: memref<1x1x1x96xf32, #tpu.memory_space<vmem>>, %arg9: memref<1x1x32x96xbf16, #tpu.memory_space<vmem>>, %arg10: memref<1x1x32x32xbf16, #tpu.memory_space<vmem>>, %arg11: memref<1x1x1x64xf32, #tpu.memory_space<vmem>>, %arg12: memref<1x1x32x64xbf16, #tpu.memory_space<vmem>>, %arg13: memref<1x1x64x32xbf16, #tpu.memory_space<vmem>>, %arg14: memref<1x32x1xbf16, #tpu.memory_space<vmem>>, %arg15: memref<1x1x1xf32, #tpu.memory_space<vmem>>, %arg16: memref<1x2x8x1xf32, #tpu.memory_space<vmem>>, %arg17: memref<1x2x8x16xf32, #tpu.memory_space<vmem>>, %arg18: memref<2x8x32xf32, #tpu.memory_space<vmem>>, %arg19: memref<2x16x32xf32, #tpu.memory_space<vmem>>) attributes {dimension_semantics = [#tpu.dimension_semantics<parallel>, #tpu.dimension_semantics<parallel>, #tpu.dimension_semantics<arbitrary>], iteration_bounds = array<i64: 1, 3, 4>, scalar_prefetch = 0 : i64, scratch_operands = 2 : i64, tpu.core_type = #tpu.core_type<tc>, window_params = [{transform_indices = @transform_0, window_bounds = array<i64: 2, 16, 32>}, {pipeline_mode = #tpu.pipeline_mode<synchronous>, transform_indices = @transform_1, window_bounds = array<i64: 8, 32>}, {pipeline_mode = #tpu.pipeline_mode<synchronous>, transform_indices = @transform_2, window_bounds = array<i64: 2, 32>}, {transform_indices = @transform_3, window_bounds = array<i64: 1, 2, 32>}, {transform_indices = @transform_4, window_bounds = array<i64: 1, 1, 6, 32>}, {transform_indices = @transform_5, window_bounds = array<i64: 1, 1, 1, 96>}, {transform_indices = @transform_6, window_bounds = array<i64: 1, 1, 32, 96>}, {transform_indices = @transform_7, window_bounds = array<i64: 1, 1, 32, 32>}, {transform_indices = @transform_8, window_bounds = array<i64: 1, 1, 1, 64>}, {transform_indices = @transform_9, window_bounds = array<i64: 1, 1, 32, 64>}, {transform_indices = @transform_10, window_bounds = array<i64: 1, 1, 64, 32>}, {transform_indices = @transform_11, window_bounds = array<i64: 1, 32, 1>}, {transform_indices = @transform_12, window_bounds = array<i64: 1, 1, 1>}, {transform_indices = @transform_13, window_bounds = array<i64: 1, 2, 8, 1>}, {transform_indices = @transform_14, window_bounds = array<i64: 1, 2, 8, 16>}]} {
    %c0_i32 = arith.constant 0 : i32
    %0 = arith.cmpi eq, %arg2, %c0_i32 : i32
    %1 = arith.extui %0 : i1 to i32
    %c0_i32_0 = arith.constant 0 : i32
    %2 = arith.cmpi ne, %1, %c0_i32_0 : i32
    scf.if %2 {
      %c0_76 = arith.constant 0 : index
      %c0_77 = arith.constant 0 : index
      %208 = vector.load %arg5[%c0_76, %c0_77] : memref<2x32xf32, #tpu.memory_space<vmem>>, vector<2x32xf32>
      %209 = vector.extract_strided_slice %208 {offsets = [0, 0], sizes = [1, 32], strides = [1, 1]} : vector<2x32xf32> to vector<1x32xf32>
      %210 = vector.extract_strided_slice %208 {offsets = [1, 0], sizes = [1, 32], strides = [1, 1]} : vector<2x32xf32> to vector<1x32xf32>
      %c0_78 = arith.constant 0 : index
      %c0_79 = arith.constant 0 : index
      %c0_80 = arith.constant 0 : index
      %211 = vector.load %arg3[%c0_78, %c0_79, %c0_80] : memref<2x16x32xf32, #tpu.memory_space<vmem>>, vector<2x16x32xf32>
      %cst_81 = arith.constant dense<0.000000e+00> : vector<2x16xf32>
      %212 = vector.multi_reduction <add>, %211, %cst_81 [2] : vector<2x16x32xf32> to vector<2x16xf32>
      %213 = vector.shape_cast %212 : vector<2x16xf32> to vector<2x16x1xf32>
      %cst_82 = arith.constant 3.200000e+01 : f32
      %214 = vector.broadcast %cst_82 : f32 to vector<2x16x1xf32>
      %215 = arith.divf %213, %214 : vector<2x16x1xf32>
      %216 = vector.broadcast %215 : vector<2x16x1xf32> to vector<2x16x32xf32>
      %217 = arith.subf %211, %216 : vector<2x16x32xf32>
      %218 = arith.mulf %217, %217 : vector<2x16x32xf32>
      %cst_83 = arith.constant dense<0.000000e+00> : vector<2x16xf32>
      %219 = vector.multi_reduction <add>, %218, %cst_83 [2] : vector<2x16x32xf32> to vector<2x16xf32>
      %220 = vector.shape_cast %219 : vector<2x16xf32> to vector<2x16x1xf32>
      %cst_84 = arith.constant 3.200000e+01 : f32
      %221 = vector.broadcast %cst_84 : f32 to vector<2x16x1xf32>
      %222 = arith.divf %220, %221 : vector<2x16x1xf32>
      %223 = vector.broadcast %215 : vector<2x16x1xf32> to vector<2x16x32xf32>
      %224 = arith.subf %211, %223 : vector<2x16x32xf32>
      %cst_85 = arith.constant 9.99999974E-6 : f32
      %225 = vector.broadcast %cst_85 : f32 to vector<2x16x1xf32>
      %226 = arith.addf %222, %225 : vector<2x16x1xf32>
      %227 = math.rsqrt %226 : vector<2x16x1xf32>
      %228 = vector.broadcast %227 : vector<2x16x1xf32> to vector<2x16x32xf32>
      %229 = arith.mulf %224, %228 : vector<2x16x32xf32>
      %230 = vector.shape_cast %209 : vector<1x32xf32> to vector<1x1x32xf32>
      %231 = vector.broadcast %230 : vector<1x1x32xf32> to vector<2x16x32xf32>
      %232 = arith.mulf %229, %231 : vector<2x16x32xf32>
      %233 = vector.shape_cast %210 : vector<1x32xf32> to vector<1x1x32xf32>
      %234 = vector.broadcast %233 : vector<1x1x32xf32> to vector<2x16x32xf32>
      %235 = arith.addf %232, %234 : vector<2x16x32xf32>
      %c0_86 = arith.constant 0 : index
      %c0_87 = arith.constant 0 : index
      %c0_88 = arith.constant 0 : index
      %236 = vector.load %arg19[%c0_86, %c0_87, %c0_88] : memref<2x16x32xf32, #tpu.memory_space<vmem>>, vector<2x16x32xf32>
      tpu.vector_store %arg19[%c0_86, %c0_87, %c0_88], %235 {strides = array<i32>} : memref<2x16x32xf32, #tpu.memory_space<vmem>>, vector<2x16x32xf32>,
      %c0_89 = arith.constant 0 : index
      %c0_90 = arith.constant 0 : index
      %237 = vector.load %arg4[%c0_89, %c0_90] : memref<8x32xf32, #tpu.memory_space<vmem>>, vector<8x32xf32>
      %cst_91 = arith.constant dense<0.000000e+00> : vector<8xf32>
      %238 = vector.multi_reduction <add>, %237, %cst_91 [1] : vector<8x32xf32> to vector<8xf32>
      %239 = vector.shape_cast %238 : vector<8xf32> to vector<8x1xf32>
      %cst_92 = arith.constant 3.200000e+01 : f32
      %240 = vector.broadcast %cst_92 : f32 to vector<8x1xf32>
      %241 = arith.divf %239, %240 : vector<8x1xf32>
      %242 = vector.broadcast %241 : vector<8x1xf32> to vector<8x32xf32>
      %243 = arith.subf %237, %242 : vector<8x32xf32>
      %244 = arith.mulf %243, %243 : vector<8x32xf32>
      %cst_93 = arith.constant dense<0.000000e+00> : vector<8xf32>
      %245 = vector.multi_reduction <add>, %244, %cst_93 [1] : vector<8x32xf32> to vector<8xf32>
      %246 = vector.shape_cast %245 : vector<8xf32> to vector<8x1xf32>
      %cst_94 = arith.constant 3.200000e+01 : f32
      %247 = vector.broadcast %cst_94 : f32 to vector<8x1xf32>
      %248 = arith.divf %246, %247 : vector<8x1xf32>
      %249 = vector.broadcast %241 : vector<8x1xf32> to vector<8x32xf32>
      %250 = arith.subf %237, %249 : vector<8x32xf32>
      %cst_95 = arith.constant 9.99999974E-6 : f32
      %251 = vector.broadcast %cst_95 : f32 to vector<8x1xf32>
      %252 = arith.addf %248, %251 : vector<8x1xf32>
      %253 = math.rsqrt %252 : vector<8x1xf32>
      %254 = vector.broadcast %253 : vector<8x1xf32> to vector<8x32xf32>
      %255 = arith.mulf %250, %254 : vector<8x32xf32>
      %256 = vector.broadcast %209 : vector<1x32xf32> to vector<8x32xf32>
      %257 = arith.mulf %255, %256 : vector<8x32xf32>
      %258 = vector.broadcast %210 : vector<1x32xf32> to vector<8x32xf32>
      %259 = arith.addf %257, %258 : vector<8x32xf32>
      %260 = vector.shape_cast %259 : vector<8x32xf32> to vector<1x8x32xf32>
      %261 = vector.shape_cast %260 : vector<1x8x32xf32> to vector<1x8x32xf32>
      %262 = vector.broadcast %261 : vector<1x8x32xf32> to vector<2x8x32xf32>
      %c0_96 = arith.constant 0 : index
      %c0_97 = arith.constant 0 : index
      %c0_98 = arith.constant 0 : index
      %263 = vector.load %arg18[%c0_96, %c0_97, %c0_98] : memref<2x8x32xf32, #tpu.memory_space<vmem>>, vector<2x8x32xf32>
      tpu.vector_store %arg18[%c0_96, %c0_97, %c0_98], %262 {strides = array<i32>} : memref<2x8x32xf32, #tpu.memory_space<vmem>>, vector<2x8x32xf32>,
    } else {
    }
    %c0_i32_1 = arith.constant 0 : i32
    %3 = arith.cmpi eq, %arg2, %c0_i32_1 : i32
    %c0_i32_2 = arith.constant 0 : i32
    %4 = arith.cmpi sgt, %arg1, %c0_i32_2 : i32
    %5 = arith.andi %3, %4 : i1
    %6 = arith.extui %5 : i1 to i32
    %c0_i32_3 = arith.constant 0 : i32
    %7 = arith.cmpi ne, %6, %c0_i32_3 : i32
    scf.if %7 {
      %c0_76 = arith.constant 0 : index
      %c0_77 = arith.constant 0 : index
      %c0_78 = arith.constant 0 : index
      %208 = vector.load %arg6[%c0_76, %c0_77, %c0_78] : memref<1x2x32xf32, #tpu.memory_space<vmem>>, vector<1x2x32xf32>
      %209 = vector.shape_cast %208 : vector<1x2x32xf32> to vector<2x32xf32>
      %210 = vector.extract_strided_slice %209 {offsets = [0, 0], sizes = [1, 32], strides = [1, 1]} : vector<2x32xf32> to vector<1x32xf32>
      %211 = vector.extract_strided_slice %209 {offsets = [1, 0], sizes = [1, 32], strides = [1, 1]} : vector<2x32xf32> to vector<1x32xf32>
      %c0_79 = arith.constant 0 : index
      %c0_80 = arith.constant 0 : index
      %c0_81 = arith.constant 0 : index
      %212 = vector.load %arg19[%c0_79, %c0_80, %c0_81] : memref<2x16x32xf32, #tpu.memory_space<vmem>>, vector<2x16x32xf32>
      %cst_82 = arith.constant dense<0.000000e+00> : vector<2x16xf32>
      %213 = vector.multi_reduction <add>, %212, %cst_82 [2] : vector<2x16x32xf32> to vector<2x16xf32>
      %214 = vector.shape_cast %213 : vector<2x16xf32> to vector<2x16x1xf32>
      %cst_83 = arith.constant 3.200000e+01 : f32
      %215 = vector.broadcast %cst_83 : f32 to vector<2x16x1xf32>
      %216 = arith.divf %214, %215 : vector<2x16x1xf32>
      %217 = vector.broadcast %216 : vector<2x16x1xf32> to vector<2x16x32xf32>
      %218 = arith.subf %212, %217 : vector<2x16x32xf32>
      %219 = arith.mulf %218, %218 : vector<2x16x32xf32>
      %cst_84 = arith.constant dense<0.000000e+00> : vector<2x16xf32>
      %220 = vector.multi_reduction <add>, %219, %cst_84 [2] : vector<2x16x32xf32> to vector<2x16xf32>
      %221 = vector.shape_cast %220 : vector<2x16xf32> to vector<2x16x1xf32>
      %cst_85 = arith.constant 3.200000e+01 : f32
      %222 = vector.broadcast %cst_85 : f32 to vector<2x16x1xf32>
      %223 = arith.divf %221, %222 : vector<2x16x1xf32>
      %224 = vector.broadcast %216 : vector<2x16x1xf32> to vector<2x16x32xf32>
      %225 = arith.subf %212, %224 : vector<2x16x32xf32>
      %cst_86 = arith.constant 9.99999974E-6 : f32
      %226 = vector.broadcast %cst_86 : f32 to vector<2x16x1xf32>
      %227 = arith.addf %223, %226 : vector<2x16x1xf32>
      %228 = math.rsqrt %227 : vector<2x16x1xf32>
      %229 = vector.broadcast %228 : vector<2x16x1xf32> to vector<2x16x32xf32>
      %230 = arith.mulf %225, %229 : vector<2x16x32xf32>
      %231 = vector.shape_cast %210 : vector<1x32xf32> to vector<1x1x32xf32>
      %232 = vector.broadcast %231 : vector<1x1x32xf32> to vector<2x16x32xf32>
      %233 = arith.mulf %230, %232 : vector<2x16x32xf32>
      %234 = vector.shape_cast %211 : vector<1x32xf32> to vector<1x1x32xf32>
      %235 = vector.broadcast %234 : vector<1x1x32xf32> to vector<2x16x32xf32>
      %236 = arith.addf %233, %235 : vector<2x16x32xf32>
      %c0_87 = arith.constant 0 : index
      %c0_88 = arith.constant 0 : index
      %c0_89 = arith.constant 0 : index
      %237 = vector.load %arg19[%c0_87, %c0_88, %c0_89] : memref<2x16x32xf32, #tpu.memory_space<vmem>>, vector<2x16x32xf32>
      tpu.vector_store %arg19[%c0_87, %c0_88, %c0_89], %236 {strides = array<i32>} : memref<2x16x32xf32, #tpu.memory_space<vmem>>, vector<2x16x32xf32>,
      %c0_90 = arith.constant 0 : index
      %c0_91 = arith.constant 0 : index
      %c0_92 = arith.constant 0 : index
      %238 = vector.load %arg18[%c0_90, %c0_91, %c0_92] : memref<2x8x32xf32, #tpu.memory_space<vmem>>, vector<2x8x32xf32>
      %cst_93 = arith.constant dense<0.000000e+00> : vector<2x8xf32>
      %239 = vector.multi_reduction <add>, %238, %cst_93 [2] : vector<2x8x32xf32> to vector<2x8xf32>
      %240 = vector.shape_cast %239 : vector<2x8xf32> to vector<2x8x1xf32>
      %cst_94 = arith.constant 3.200000e+01 : f32
      %241 = vector.broadcast %cst_94 : f32 to vector<2x8x1xf32>
      %242 = arith.divf %240, %241 : vector<2x8x1xf32>
      %243 = vector.broadcast %242 : vector<2x8x1xf32> to vector<2x8x32xf32>
      %244 = arith.subf %238, %243 : vector<2x8x32xf32>
      %245 = arith.mulf %244, %244 : vector<2x8x32xf32>
      %cst_95 = arith.constant dense<0.000000e+00> : vector<2x8xf32>
      %246 = vector.multi_reduction <add>, %245, %cst_95 [2] : vector<2x8x32xf32> to vector<2x8xf32>
      %247 = vector.shape_cast %246 : vector<2x8xf32> to vector<2x8x1xf32>
      %cst_96 = arith.constant 3.200000e+01 : f32
      %248 = vector.broadcast %cst_96 : f32 to vector<2x8x1xf32>
      %249 = arith.divf %247, %248 : vector<2x8x1xf32>
      %250 = vector.broadcast %242 : vector<2x8x1xf32> to vector<2x8x32xf32>
      %251 = arith.subf %238, %250 : vector<2x8x32xf32>
      %cst_97 = arith.constant 9.99999974E-6 : f32
      %252 = vector.broadcast %cst_97 : f32 to vector<2x8x1xf32>
      %253 = arith.addf %249, %252 : vector<2x8x1xf32>
      %254 = math.rsqrt %253 : vector<2x8x1xf32>
      %255 = vector.broadcast %254 : vector<2x8x1xf32> to vector<2x8x32xf32>
      %256 = arith.mulf %251, %255 : vector<2x8x32xf32>
      %257 = vector.shape_cast %210 : vector<1x32xf32> to vector<1x1x32xf32>
      %258 = vector.broadcast %257 : vector<1x1x32xf32> to vector<2x8x32xf32>
      %259 = arith.mulf %256, %258 : vector<2x8x32xf32>
      %260 = vector.shape_cast %211 : vector<1x32xf32> to vector<1x1x32xf32>
      %261 = vector.broadcast %260 : vector<1x1x32xf32> to vector<2x8x32xf32>
      %262 = arith.addf %259, %261 : vector<2x8x32xf32>
      %c0_98 = arith.constant 0 : index
      %c0_99 = arith.constant 0 : index
      %c0_100 = arith.constant 0 : index
      %263 = vector.load %arg18[%c0_98, %c0_99, %c0_100] : memref<2x8x32xf32, #tpu.memory_space<vmem>>, vector<2x8x32xf32>
      tpu.vector_store %arg18[%c0_98, %c0_99, %c0_100], %262 {strides = array<i32>} : memref<2x8x32xf32, #tpu.memory_space<vmem>>, vector<2x8x32xf32>,
    } else {
    }
    %c0 = arith.constant 0 : index
    %c0_4 = arith.constant 0 : index
    %c0_5 = arith.constant 0 : index
    %c0_6 = arith.constant 0 : index
    %8 = vector.load %arg7[%c0, %c0_4, %c0_5, %c0_6] : memref<1x1x6x32xf32, #tpu.memory_space<vmem>>, vector<1x1x6x32xf32>
    %9 = vector.shape_cast %8 : vector<1x1x6x32xf32> to vector<6x32xf32>
    %10 = vector.extract_strided_slice %9 {offsets = [0, 0], sizes = [1, 32], strides = [1, 1]} : vector<6x32xf32> to vector<1x32xf32>
    %11 = vector.extract_strided_slice %9 {offsets = [1, 0], sizes = [1, 32], strides = [1, 1]} : vector<6x32xf32> to vector<1x32xf32>
    %12 = vector.extract_strided_slice %9 {offsets = [2, 0], sizes = [1, 32], strides = [1, 1]} : vector<6x32xf32> to vector<1x32xf32>
    %13 = vector.extract_strided_slice %9 {offsets = [3, 0], sizes = [1, 32], strides = [1, 1]} : vector<6x32xf32> to vector<1x32xf32>
    %14 = vector.extract_strided_slice %9 {offsets = [4, 0], sizes = [1, 32], strides = [1, 1]} : vector<6x32xf32> to vector<1x32xf32>
    %15 = vector.extract_strided_slice %9 {offsets = [5, 0], sizes = [1, 32], strides = [1, 1]} : vector<6x32xf32> to vector<1x32xf32>
    %c0_7 = arith.constant 0 : index
    %c0_8 = arith.constant 0 : index
    %c0_9 = arith.constant 0 : index
    %c0_10 = arith.constant 0 : index
    %16 = vector.load %arg8[%c0_7, %c0_8, %c0_9, %c0_10] : memref<1x1x1x96xf32, #tpu.memory_space<vmem>>, vector<1x1x1x96xf32>
    %17 = vector.shape_cast %16 : vector<1x1x1x96xf32> to vector<1x96xf32>
    %c0_11 = arith.constant 0 : index
    %c0_12 = arith.constant 0 : index
    %c0_13 = arith.constant 0 : index
    %c0_14 = arith.constant 0 : index
    %18 = vector.load %arg9[%c0_11, %c0_12, %c0_13, %c0_14] : memref<1x1x32x96xbf16, #tpu.memory_space<vmem>>, vector<1x1x32x96xbf16>
    %19 = vector.shape_cast %18 : vector<1x1x32x96xbf16> to vector<32x96xbf16>
    %c0_15 = arith.constant 0 : index
    %c0_16 = arith.constant 0 : index
    %c0_17 = arith.constant 0 : index
    %c0_18 = arith.constant 0 : index
    %20 = vector.load %arg10[%c0_15, %c0_16, %c0_17, %c0_18] : memref<1x1x32x32xbf16, #tpu.memory_space<vmem>>, vector<1x1x32x32xbf16>
    %21 = vector.shape_cast %20 : vector<1x1x32x32xbf16> to vector<32x32xbf16>
    %c0_19 = arith.constant 0 : index
    %c0_20 = arith.constant 0 : index
    %c0_21 = arith.constant 0 : index
    %c0_22 = arith.constant 0 : index
    %22 = vector.load %arg12[%c0_19, %c0_20, %c0_21, %c0_22] : memref<1x1x32x64xbf16, #tpu.memory_space<vmem>>, vector<1x1x32x64xbf16>
    %23 = vector.shape_cast %22 : vector<1x1x32x64xbf16> to vector<32x64xbf16>
    %c0_23 = arith.constant 0 : index
    %c0_24 = arith.constant 0 : index
    %c0_25 = arith.constant 0 : index
    %c0_26 = arith.constant 0 : index
    %24 = vector.load %arg11[%c0_23, %c0_24, %c0_25, %c0_26] : memref<1x1x1x64xf32, #tpu.memory_space<vmem>>, vector<1x1x1x64xf32>
    %25 = vector.shape_cast %24 : vector<1x1x1x64xf32> to vector<1x64xf32>
    %c0_27 = arith.constant 0 : index
    %c0_28 = arith.constant 0 : index
    %c0_29 = arith.constant 0 : index
    %c0_30 = arith.constant 0 : index
    %26 = vector.load %arg13[%c0_27, %c0_28, %c0_29, %c0_30] : memref<1x1x64x32xbf16, #tpu.memory_space<vmem>>, vector<1x1x64x32xbf16>
    %27 = vector.shape_cast %26 : vector<1x1x64x32xbf16> to vector<64x32xbf16>
    %c0_31 = arith.constant 0 : index
    %c0_32 = arith.constant 0 : index
    %c0_33 = arith.constant 0 : index
    %28 = vector.load %arg18[%c0_31, %c0_32, %c0_33] : memref<2x8x32xf32, #tpu.memory_space<vmem>>, vector<2x8x32xf32>
    %c0_34 = arith.constant 0 : index
    %c0_35 = arith.constant 0 : index
    %c0_36 = arith.constant 0 : index
    %29 = vector.load %arg19[%c0_34, %c0_35, %c0_36] : memref<2x16x32xf32, #tpu.memory_space<vmem>>, vector<2x16x32xf32>
    %cst = arith.constant dense<0.000000e+00> : vector<2x8xf32>
    %30 = vector.multi_reduction <add>, %28, %cst [2] : vector<2x8x32xf32> to vector<2x8xf32>
    %31 = vector.shape_cast %30 : vector<2x8xf32> to vector<2x8x1xf32>
    %cst_37 = arith.constant 3.200000e+01 : f32
    %32 = vector.broadcast %cst_37 : f32 to vector<2x8x1xf32>
    %33 = arith.divf %31, %32 : vector<2x8x1xf32>
    %34 = vector.broadcast %33 : vector<2x8x1xf32> to vector<2x8x32xf32>
    %35 = arith.subf %28, %34 : vector<2x8x32xf32>
    %36 = arith.mulf %35, %35 : vector<2x8x32xf32>
    %cst_38 = arith.constant dense<0.000000e+00> : vector<2x8xf32>
    %37 = vector.multi_reduction <add>, %36, %cst_38 [2] : vector<2x8x32xf32> to vector<2x8xf32>
    %38 = vector.shape_cast %37 : vector<2x8xf32> to vector<2x8x1xf32>
    %cst_39 = arith.constant 3.200000e+01 : f32
    %39 = vector.broadcast %cst_39 : f32 to vector<2x8x1xf32>
    %40 = arith.divf %38, %39 : vector<2x8x1xf32>
    %41 = vector.broadcast %33 : vector<2x8x1xf32> to vector<2x8x32xf32>
    %42 = arith.subf %28, %41 : vector<2x8x32xf32>
    %cst_40 = arith.constant 9.99999974E-6 : f32
    %43 = vector.broadcast %cst_40 : f32 to vector<2x8x1xf32>
    %44 = arith.addf %40, %43 : vector<2x8x1xf32>
    %45 = math.rsqrt %44 : vector<2x8x1xf32>
    %46 = vector.broadcast %45 : vector<2x8x1xf32> to vector<2x8x32xf32>
    %47 = arith.mulf %42, %46 : vector<2x8x32xf32>
    %48 = vector.shape_cast %10 : vector<1x32xf32> to vector<1x1x32xf32>
    %49 = vector.broadcast %48 : vector<1x1x32xf32> to vector<2x8x32xf32>
    %50 = arith.mulf %47, %49 : vector<2x8x32xf32>
    %51 = vector.shape_cast %11 : vector<1x32xf32> to vector<1x1x32xf32>
    %52 = vector.broadcast %51 : vector<1x1x32xf32> to vector<2x8x32xf32>
    %53 = arith.addf %50, %52 : vector<2x8x32xf32>
    %54 = vector.shape_cast %53 : vector<2x8x32xf32> to vector<16x32xf32>
    %55 = vector.extract_strided_slice %19 {offsets = [0, 0], sizes = [32, 32], strides = [1, 1]} : vector<32x96xbf16> to vector<32x32xbf16>
    %56 = vector.extract_strided_slice %17 {offsets = [0, 0], sizes = [1, 32], strides = [1, 1]} : vector<1x96xf32> to vector<1x32xf32>
    %57 = arith.truncf %54 : vector<16x32xf32> to vector<16x32xbf16>
    %cst_41 = arith.constant dense<0.000000e+00> : vector<16x32xf32>
    %58 = tpu.matmul %57, %55, %cst_41 {dimension_numbers = #tpu.dot_dimension_numbers<[1], [0], [0], [1], [0, 0, 1, 1], [], []>} : vector<16x32xbf16>, vector<32x32xbf16>, vector<16x32xf32> -> vector<16x32xf32>
    %59 = vector.broadcast %56 : vector<1x32xf32> to vector<16x32xf32>
    %60 = arith.addf %58, %59 : vector<16x32xf32>
    %61 = vector.shape_cast %60 : vector<16x32xf32> to vector<2x8x32xf32>
    %62 = vector.shape_cast %29 : vector<2x16x32xf32> to vector<32x32xf32>
    %63 = vector.extract_strided_slice %19 {offsets = [0, 32], sizes = [32, 64], strides = [1, 1]} : vector<32x96xbf16> to vector<32x64xbf16>
    %64 = vector.extract_strided_slice %17 {offsets = [0, 32], sizes = [1, 64], strides = [1, 1]} : vector<1x96xf32> to vector<1x64xf32>
    %65 = arith.truncf %62 : vector<32x32xf32> to vector<32x32xbf16>
    %cst_42 = arith.constant dense<0.000000e+00> : vector<32x64xf32>
    %66 = tpu.matmul %65, %63, %cst_42 {dimension_numbers = #tpu.dot_dimension_numbers<[1], [0], [0], [1], [0, 0, 1, 1], [], []>} : vector<32x32xbf16>, vector<32x64xbf16>, vector<32x64xf32> -> vector<32x64xf32>
    %67 = vector.broadcast %64 : vector<1x64xf32> to vector<32x64xf32>
    %68 = arith.addf %66, %67 : vector<32x64xf32>
    %69 = vector.extract_strided_slice %68 {offsets = [0, 0], sizes = [32, 32], strides = [1, 1]} : vector<32x64xf32> to vector<32x32xf32>
    %70 = vector.shape_cast %69 : vector<32x32xf32> to vector<2x16x32xf32>
    %71 = vector.extract_strided_slice %68 {offsets = [0, 32], sizes = [32, 32], strides = [1, 1]} : vector<32x64xf32> to vector<32x32xf32>
    %72 = vector.shape_cast %71 : vector<32x32xf32> to vector<2x16x32xf32>
    %73 = vector.extract_strided_slice %61 {offsets = [0, 0, 0], sizes = [2, 8, 8], strides = [1, 1, 1]} : vector<2x8x32xf32> to vector<2x8x8xf32>
    %74 = arith.truncf %73 : vector<2x8x8xf32> to vector<2x8x8xbf16>
    %75 = vector.extract_strided_slice %70 {offsets = [0, 0, 0], sizes = [2, 16, 8], strides = [1, 1, 1]} : vector<2x16x32xf32> to vector<2x16x8xf32>
    %76 = arith.truncf %75 : vector<2x16x8xf32> to vector<2x16x8xbf16>
    %77 = vector.extract_strided_slice %72 {offsets = [0, 0, 0], sizes = [2, 16, 8], strides = [1, 1, 1]} : vector<2x16x32xf32> to vector<2x16x8xf32>
    %78 = arith.truncf %77 : vector<2x16x8xf32> to vector<2x16x8xbf16>
    "tpu.trace_start"() <{level = 10 : i32, message = "bqd,bkd->bqk"}> : () -> ()
    %cst_43 = arith.constant dense<0.000000e+00> : vector<2x8x16xf32>
    %79 = tpu.matmul %74, %76, %cst_43 {dimension_numbers = #tpu.dot_dimension_numbers<[2], [2], [1], [1], [0, 0, 0, 1, 1, 1], [0], [0]>} : vector<2x8x8xbf16>, vector<2x16x8xbf16>, vector<2x8x16xf32> -> vector<2x8x16xf32>
    "tpu.trace_stop"() : () -> ()
    %cst_44 = arith.constant 0.353553385 : f32
    %80 = vector.broadcast %cst_44 : f32 to vector<2x8x16xf32>
    %81 = arith.mulf %79, %80 : vector<2x8x16xf32>
    %cst_45 = arith.constant dense<0xFF800000> : vector<2x8xf32>
    %82 = vector.multi_reduction <maximumf>, %81, %cst_45 [2] : vector<2x8x16xf32> to vector<2x8xf32>
    %83 = vector.shape_cast %82 : vector<2x8xf32> to vector<2x8x1xf32>
    %84 = vector.broadcast %83 : vector<2x8x1xf32> to vector<2x8x16xf32>
    %85 = arith.subf %81, %84 : vector<2x8x16xf32>
    %86 = math.exp %85 : vector<2x8x16xf32>
    %cst_46 = arith.constant dense<0.000000e+00> : vector<2x8xf32>
    %87 = vector.multi_reduction <add>, %86, %cst_46 [2] : vector<2x8x16xf32> to vector<2x8xf32>
    %88 = vector.shape_cast %87 : vector<2x8xf32> to vector<2x8x1xf32>
    %89 = vector.broadcast %88 : vector<2x8x1xf32> to vector<2x8x16xf32>
    %90 = arith.divf %86, %89 : vector<2x8x16xf32>
    %91 = arith.truncf %90 : vector<2x8x16xf32> to vector<2x8x16xbf16>
    "tpu.trace_start"() <{level = 10 : i32, message = "bqk,bkd->bqd"}> : () -> ()
    %cst_47 = arith.constant dense<0.000000e+00> : vector<2x8x8xf32>
    %92 = tpu.matmul %91, %78, %cst_47 {dimension_numbers = #tpu.dot_dimension_numbers<[2], [1], [1], [2], [0, 0, 0, 1, 1, 2], [0], [0]>} : vector<2x8x16xbf16>, vector<2x16x8xbf16>, vector<2x8x8xf32> -> vector<2x8x8xf32>
    "tpu.trace_stop"() : () -> ()
    %93 = arith.truncf %92 : vector<2x8x8xf32> to vector<2x8x8xbf16>
    %94 = vector.extract_strided_slice %61 {offsets = [0, 0, 8], sizes = [2, 8, 8], strides = [1, 1, 1]} : vector<2x8x32xf32> to vector<2x8x8xf32>
    %95 = arith.truncf %94 : vector<2x8x8xf32> to vector<2x8x8xbf16>
    %96 = vector.extract_strided_slice %70 {offsets = [0, 0, 8], sizes = [2, 16, 8], strides = [1, 1, 1]} : vector<2x16x32xf32> to vector<2x16x8xf32>
    %97 = arith.truncf %96 : vector<2x16x8xf32> to vector<2x16x8xbf16>
    %98 = vector.extract_strided_slice %72 {offsets = [0, 0, 8], sizes = [2, 16, 8], strides = [1, 1, 1]} : vector<2x16x32xf32> to vector<2x16x8xf32>
    %99 = arith.truncf %98 : vector<2x16x8xf32> to vector<2x16x8xbf16>
    "tpu.trace_start"() <{level = 10 : i32, message = "bqd,bkd->bqk"}> : () -> ()
    %cst_48 = arith.constant dense<0.000000e+00> : vector<2x8x16xf32>
    %100 = tpu.matmul %95, %97, %cst_48 {dimension_numbers = #tpu.dot_dimension_numbers<[2], [2], [1], [1], [0, 0, 0, 1, 1, 1], [0], [0]>} : vector<2x8x8xbf16>, vector<2x16x8xbf16>, vector<2x8x16xf32> -> vector<2x8x16xf32>
    "tpu.trace_stop"() : () -> ()
    %cst_49 = arith.constant 0.353553385 : f32
    %101 = vector.broadcast %cst_49 : f32 to vector<2x8x16xf32>
    %102 = arith.mulf %100, %101 : vector<2x8x16xf32>
    %cst_50 = arith.constant dense<0xFF800000> : vector<2x8xf32>
    %103 = vector.multi_reduction <maximumf>, %102, %cst_50 [2] : vector<2x8x16xf32> to vector<2x8xf32>
    %104 = vector.shape_cast %103 : vector<2x8xf32> to vector<2x8x1xf32>
    %105 = vector.broadcast %104 : vector<2x8x1xf32> to vector<2x8x16xf32>
    %106 = arith.subf %102, %105 : vector<2x8x16xf32>
    %107 = math.exp %106 : vector<2x8x16xf32>
    %cst_51 = arith.constant dense<0.000000e+00> : vector<2x8xf32>
    %108 = vector.multi_reduction <add>, %107, %cst_51 [2] : vector<2x8x16xf32> to vector<2x8xf32>
    %109 = vector.shape_cast %108 : vector<2x8xf32> to vector<2x8x1xf32>
    %110 = vector.broadcast %109 : vector<2x8x1xf32> to vector<2x8x16xf32>
    %111 = arith.divf %107, %110 : vector<2x8x16xf32>
    %112 = arith.truncf %111 : vector<2x8x16xf32> to vector<2x8x16xbf16>
    "tpu.trace_start"() <{level = 10 : i32, message = "bqk,bkd->bqd"}> : () -> ()
    %cst_52 = arith.constant dense<0.000000e+00> : vector<2x8x8xf32>
    %113 = tpu.matmul %112, %99, %cst_52 {dimension_numbers = #tpu.dot_dimension_numbers<[2], [1], [1], [2], [0, 0, 0, 1, 1, 2], [0], [0]>} : vector<2x8x16xbf16>, vector<2x16x8xbf16>, vector<2x8x8xf32> -> vector<2x8x8xf32>
    "tpu.trace_stop"() : () -> ()
    %114 = arith.truncf %113 : vector<2x8x8xf32> to vector<2x8x8xbf16>
    %115 = arith.addf %90, %111 : vector<2x8x16xf32>
    %116 = vector.extract_strided_slice %61 {offsets = [0, 0, 16], sizes = [2, 8, 8], strides = [1, 1, 1]} : vector<2x8x32xf32> to vector<2x8x8xf32>
    %117 = arith.truncf %116 : vector<2x8x8xf32> to vector<2x8x8xbf16>
    %118 = vector.extract_strided_slice %70 {offsets = [0, 0, 16], sizes = [2, 16, 8], strides = [1, 1, 1]} : vector<2x16x32xf32> to vector<2x16x8xf32>
    %119 = arith.truncf %118 : vector<2x16x8xf32> to vector<2x16x8xbf16>
    %120 = vector.extract_strided_slice %72 {offsets = [0, 0, 16], sizes = [2, 16, 8], strides = [1, 1, 1]} : vector<2x16x32xf32> to vector<2x16x8xf32>
    %121 = arith.truncf %120 : vector<2x16x8xf32> to vector<2x16x8xbf16>
    "tpu.trace_start"() <{level = 10 : i32, message = "bqd,bkd->bqk"}> : () -> ()
    %cst_53 = arith.constant dense<0.000000e+00> : vector<2x8x16xf32>
    %122 = tpu.matmul %117, %119, %cst_53 {dimension_numbers = #tpu.dot_dimension_numbers<[2], [2], [1], [1], [0, 0, 0, 1, 1, 1], [0], [0]>} : vector<2x8x8xbf16>, vector<2x16x8xbf16>, vector<2x8x16xf32> -> vector<2x8x16xf32>
    "tpu.trace_stop"() : () -> ()
    %cst_54 = arith.constant 0.353553385 : f32
    %123 = vector.broadcast %cst_54 : f32 to vector<2x8x16xf32>
    %124 = arith.mulf %122, %123 : vector<2x8x16xf32>
    %cst_55 = arith.constant dense<0xFF800000> : vector<2x8xf32>
    %125 = vector.multi_reduction <maximumf>, %124, %cst_55 [2] : vector<2x8x16xf32> to vector<2x8xf32>
    %126 = vector.shape_cast %125 : vector<2x8xf32> to vector<2x8x1xf32>
    %127 = vector.broadcast %126 : vector<2x8x1xf32> to vector<2x8x16xf32>
    %128 = arith.subf %124, %127 : vector<2x8x16xf32>
    %129 = math.exp %128 : vector<2x8x16xf32>
    %cst_56 = arith.constant dense<0.000000e+00> : vector<2x8xf32>
    %130 = vector.multi_reduction <add>, %129, %cst_56 [2] : vector<2x8x16xf32> to vector<2x8xf32>
    %131 = vector.shape_cast %130 : vector<2x8xf32> to vector<2x8x1xf32>
    %132 = vector.broadcast %131 : vector<2x8x1xf32> to vector<2x8x16xf32>
    %133 = arith.divf %129, %132 : vector<2x8x16xf32>
    %134 = arith.truncf %133 : vector<2x8x16xf32> to vector<2x8x16xbf16>
    "tpu.trace_start"() <{level = 10 : i32, message = "bqk,bkd->bqd"}> : () -> ()
    %cst_57 = arith.constant dense<0.000000e+00> : vector<2x8x8xf32>
    %135 = tpu.matmul %134, %121, %cst_57 {dimension_numbers = #tpu.dot_dimension_numbers<[2], [1], [1], [2], [0, 0, 0, 1, 1, 2], [0], [0]>} : vector<2x8x16xbf16>, vector<2x16x8xbf16>, vector<2x8x8xf32> -> vector<2x8x8xf32>
    "tpu.trace_stop"() : () -> ()
    %136 = arith.truncf %135 : vector<2x8x8xf32> to vector<2x8x8xbf16>
    %137 = arith.addf %115, %133 : vector<2x8x16xf32>
    %138 = vector.extract_strided_slice %61 {offsets = [0, 0, 24], sizes = [2, 8, 8], strides = [1, 1, 1]} : vector<2x8x32xf32> to vector<2x8x8xf32>
    %139 = arith.truncf %138 : vector<2x8x8xf32> to vector<2x8x8xbf16>
    %140 = vector.extract_strided_slice %70 {offsets = [0, 0, 24], sizes = [2, 16, 8], strides = [1, 1, 1]} : vector<2x16x32xf32> to vector<2x16x8xf32>
    %141 = arith.truncf %140 : vector<2x16x8xf32> to vector<2x16x8xbf16>
    %142 = vector.extract_strided_slice %72 {offsets = [0, 0, 24], sizes = [2, 16, 8], strides = [1, 1, 1]} : vector<2x16x32xf32> to vector<2x16x8xf32>
    %143 = arith.truncf %142 : vector<2x16x8xf32> to vector<2x16x8xbf16>
    "tpu.trace_start"() <{level = 10 : i32, message = "bqd,bkd->bqk"}> : () -> ()
    %cst_58 = arith.constant dense<0.000000e+00> : vector<2x8x16xf32>
    %144 = tpu.matmul %139, %141, %cst_58 {dimension_numbers = #tpu.dot_dimension_numbers<[2], [2], [1], [1], [0, 0, 0, 1, 1, 1], [0], [0]>} : vector<2x8x8xbf16>, vector<2x16x8xbf16>, vector<2x8x16xf32> -> vector<2x8x16xf32>
    "tpu.trace_stop"() : () -> ()
    %cst_59 = arith.constant 0.353553385 : f32
    %145 = vector.broadcast %cst_59 : f32 to vector<2x8x16xf32>
    %146 = arith.mulf %144, %145 : vector<2x8x16xf32>
    %cst_60 = arith.constant dense<0xFF800000> : vector<2x8xf32>
    %147 = vector.multi_reduction <maximumf>, %146, %cst_60 [2] : vector<2x8x16xf32> to vector<2x8xf32>
    %148 = vector.shape_cast %147 : vector<2x8xf32> to vector<2x8x1xf32>
    %149 = vector.broadcast %148 : vector<2x8x1xf32> to vector<2x8x16xf32>
    %150 = arith.subf %146, %149 : vector<2x8x16xf32>
    %151 = math.exp %150 : vector<2x8x16xf32>
    %cst_61 = arith.constant dense<0.000000e+00> : vector<2x8xf32>
    %152 = vector.multi_reduction <add>, %151, %cst_61 [2] : vector<2x8x16xf32> to vector<2x8xf32>
    %153 = vector.shape_cast %152 : vector<2x8xf32> to vector<2x8x1xf32>
    %154 = vector.broadcast %153 : vector<2x8x1xf32> to vector<2x8x16xf32>
    %155 = arith.divf %151, %154 : vector<2x8x16xf32>
    %156 = arith.truncf %155 : vector<2x8x16xf32> to vector<2x8x16xbf16>
    "tpu.trace_start"() <{level = 10 : i32, message = "bqk,bkd->bqd"}> : () -> ()
    %cst_62 = arith.constant dense<0.000000e+00> : vector<2x8x8xf32>
    %157 = tpu.matmul %156, %143, %cst_62 {dimension_numbers = #tpu.dot_dimension_numbers<[2], [1], [1], [2], [0, 0, 0, 1, 1, 2], [0], [0]>} : vector<2x8x16xbf16>, vector<2x16x8xbf16>, vector<2x8x8xf32> -> vector<2x8x8xf32>
    "tpu.trace_stop"() : () -> ()
    %158 = arith.truncf %157 : vector<2x8x8xf32> to vector<2x8x8xbf16>
    %159 = arith.addf %137, %155 : vector<2x8x16xf32>
    %160 = tpu.concatenate %93, %114, %136, %158 in 2 : vector<2x8x8xbf16>, vector<2x8x8xbf16>, vector<2x8x8xbf16>, vector<2x8x8xbf16> -> vector<2x8x32xbf16>
    %161 = vector.shape_cast %160 : vector<2x8x32xbf16> to vector<16x32xbf16>
    %cst_63 = arith.constant dense<0.000000e+00> : vector<16x32xf32>
    %162 = tpu.matmul %161, %21, %cst_63 {dimension_numbers = #tpu.dot_dimension_numbers<[1], [0], [0], [1], [0, 0, 1, 1], [], []>} : vector<16x32xbf16>, vector<32x32xbf16>, vector<16x32xf32> -> vector<16x32xf32>
    %163 = vector.broadcast %14 : vector<1x32xf32> to vector<16x32xf32>
    %164 = arith.addf %162, %163 : vector<16x32xf32>
    %165 = vector.shape_cast %164 : vector<16x32xf32> to vector<2x8x32xf32>
    %166 = arith.addf %28, %165 : vector<2x8x32xf32>
    %cst_64 = arith.constant dense<0.000000e+00> : vector<2x8xf32>
    %167 = vector.multi_reduction <add>, %166, %cst_64 [2] : vector<2x8x32xf32> to vector<2x8xf32>
    %168 = vector.shape_cast %167 : vector<2x8xf32> to vector<2x8x1xf32>
    %cst_65 = arith.constant 3.200000e+01 : f32
    %169 = vector.broadcast %cst_65 : f32 to vector<2x8x1xf32>
    %170 = arith.divf %168, %169 : vector<2x8x1xf32>
    %171 = vector.broadcast %170 : vector<2x8x1xf32> to vector<2x8x32xf32>
    %172 = arith.subf %166, %171 : vector<2x8x32xf32>
    %173 = arith.mulf %172, %172 : vector<2x8x32xf32>
    %cst_66 = arith.constant dense<0.000000e+00> : vector<2x8xf32>
    %174 = vector.multi_reduction <add>, %173, %cst_66 [2] : vector<2x8x32xf32> to vector<2x8xf32>
    %175 = vector.shape_cast %174 : vector<2x8xf32> to vector<2x8x1xf32>
    %cst_67 = arith.constant 3.200000e+01 : f32
    %176 = vector.broadcast %cst_67 : f32 to vector<2x8x1xf32>
    %177 = arith.divf %175, %176 : vector<2x8x1xf32>
    %178 = vector.broadcast %170 : vector<2x8x1xf32> to vector<2x8x32xf32>
    %179 = arith.subf %166, %178 : vector<2x8x32xf32>
    %cst_68 = arith.constant 9.99999974E-6 : f32
    %180 = vector.broadcast %cst_68 : f32 to vector<2x8x1xf32>
    %181 = arith.addf %177, %180 : vector<2x8x1xf32>
    %182 = math.rsqrt %181 : vector<2x8x1xf32>
    %183 = vector.broadcast %182 : vector<2x8x1xf32> to vector<2x8x32xf32>
    %184 = arith.mulf %179, %183 : vector<2x8x32xf32>
    %185 = vector.shape_cast %12 : vector<1x32xf32> to vector<1x1x32xf32>
    %186 = vector.broadcast %185 : vector<1x1x32xf32> to vector<2x8x32xf32>
    %187 = arith.mulf %184, %186 : vector<2x8x32xf32>
    %188 = vector.shape_cast %13 : vector<1x32xf32> to vector<1x1x32xf32>
    %189 = vector.broadcast %188 : vector<1x1x32xf32> to vector<2x8x32xf32>
    %190 = arith.addf %187, %189 : vector<2x8x32xf32>
    %191 = vector.shape_cast %190 : vector<2x8x32xf32> to vector<16x32xf32>
    %192 = arith.truncf %191 : vector<16x32xf32> to vector<16x32xbf16>
    %cst_69 = arith.constant dense<0.000000e+00> : vector<16x64xf32>
    %193 = tpu.matmul %192, %23, %cst_69 {dimension_numbers = #tpu.dot_dimension_numbers<[1], [0], [0], [1], [0, 0, 1, 1], [], []>} : vector<16x32xbf16>, vector<32x64xbf16>, vector<16x64xf32> -> vector<16x64xf32>
    %194 = vector.broadcast %25 : vector<1x64xf32> to vector<16x64xf32>
    %195 = arith.addf %193, %194 : vector<16x64xf32>
    %cst_70 = arith.constant 0.000000e+00 : f32
    %196 = vector.broadcast %cst_70 : f32 to vector<16x64xf32>
    %197 = arith.maximumf %195, %196 : vector<16x64xf32>
    %198 = arith.truncf %197 : vector<16x64xf32> to vector<16x64xbf16>
    %cst_71 = arith.constant dense<0.000000e+00> : vector<16x32xf32>
    %199 = tpu.matmul %198, %27, %cst_71 {dimension_numbers = #tpu.dot_dimension_numbers<[1], [0], [0], [1], [0, 0, 1, 1], [], []>} : vector<16x64xbf16>, vector<64x32xbf16>, vector<16x32xf32> -> vector<16x32xf32>
    %200 = vector.broadcast %15 : vector<1x32xf32> to vector<16x32xf32>
    %201 = arith.addf %199, %200 : vector<16x32xf32>
    %202 = vector.shape_cast %201 : vector<16x32xf32> to vector<2x8x32xf32>
    %203 = arith.addf %166, %202 : vector<2x8x32xf32>
    %c0_72 = arith.constant 0 : index
    %c0_73 = arith.constant 0 : index
    %c0_74 = arith.constant 0 : index
    %204 = vector.load %arg18[%c0_72, %c0_73, %c0_74] : memref<2x8x32xf32, #tpu.memory_space<vmem>>, vector<2x8x32xf32>
    tpu.vector_store %arg18[%c0_72, %c0_73, %c0_74], %203 {strides = array<i32>} : memref<2x8x32xf32, #tpu.memory_space<vmem>>, vector<2x8x32xf32>,
    %c3_i32 = arith.constant 3 : i32
    %205 = arith.cmpi eq, %arg2, %c3_i32 : i32
    %206 = arith.extui %205 : i1 to i32
    %c0_i32_75 = arith.constant 0 : i32
    %207 = arith.cmpi ne, %206, %c0_i32_75 : i32
    scf.if %207 {
      %c0_76 = arith.constant 0 : index
      %c0_77 = arith.constant 0 : index
      %c0_78 = arith.constant 0 : index
      %208 = vector.load %arg6[%c0_76, %c0_77, %c0_78] : memref<1x2x32xf32, #tpu.memory_space<vmem>>, vector<1x2x32xf32>
      %209 = vector.shape_cast %208 : vector<1x2x32xf32> to vector<2x32xf32>
      %210 = vector.extract_strided_slice %209 {offsets = [0, 0], sizes = [1, 32], strides = [1, 1]} : vector<2x32xf32> to vector<1x32xf32>
      %211 = vector.extract_strided_slice %209 {offsets = [1, 0], sizes = [1, 32], strides = [1, 1]} : vector<2x32xf32> to vector<1x32xf32>
      %cst_79 = arith.constant dense<0.000000e+00> : vector<2x8xf32>
      %212 = vector.multi_reduction <add>, %203, %cst_79 [2] : vector<2x8x32xf32> to vector<2x8xf32>
      %213 = vector.shape_cast %212 : vector<2x8xf32> to vector<2x8x1xf32>
      %cst_80 = arith.constant 3.200000e+01 : f32
      %214 = vector.broadcast %cst_80 : f32 to vector<2x8x1xf32>
      %215 = arith.divf %213, %214 : vector<2x8x1xf32>
      %216 = vector.broadcast %215 : vector<2x8x1xf32> to vector<2x8x32xf32>
      %217 = arith.subf %203, %216 : vector<2x8x32xf32>
      %218 = arith.mulf %217, %217 : vector<2x8x32xf32>
      %cst_81 = arith.constant dense<0.000000e+00> : vector<2x8xf32>
      %219 = vector.multi_reduction <add>, %218, %cst_81 [2] : vector<2x8x32xf32> to vector<2x8xf32>
      %220 = vector.shape_cast %219 : vector<2x8xf32> to vector<2x8x1xf32>
      %cst_82 = arith.constant 3.200000e+01 : f32
      %221 = vector.broadcast %cst_82 : f32 to vector<2x8x1xf32>
      %222 = arith.divf %220, %221 : vector<2x8x1xf32>
      %223 = vector.broadcast %215 : vector<2x8x1xf32> to vector<2x8x32xf32>
      %224 = arith.subf %203, %223 : vector<2x8x32xf32>
      %cst_83 = arith.constant 9.99999974E-6 : f32
      %225 = vector.broadcast %cst_83 : f32 to vector<2x8x1xf32>
      %226 = arith.addf %222, %225 : vector<2x8x1xf32>
      %227 = math.rsqrt %226 : vector<2x8x1xf32>
      %228 = vector.broadcast %227 : vector<2x8x1xf32> to vector<2x8x32xf32>
      %229 = arith.mulf %224, %228 : vector<2x8x32xf32>
      %230 = vector.shape_cast %210 : vector<1x32xf32> to vector<1x1x32xf32>
      %231 = vector.broadcast %230 : vector<1x1x32xf32> to vector<2x8x32xf32>
      %232 = arith.mulf %229, %231 : vector<2x8x32xf32>
      %233 = vector.shape_cast %211 : vector<1x32xf32> to vector<1x1x32xf32>
      %234 = vector.broadcast %233 : vector<1x1x32xf32> to vector<2x8x32xf32>
      %235 = arith.addf %232, %234 : vector<2x8x32xf32>
      %236 = vector.shape_cast %235 : vector<2x8x32xf32> to vector<16x32xf32>
      %237 = arith.truncf %236 : vector<16x32xf32> to vector<16x32xbf16>
      %c0_84 = arith.constant 0 : index
      %c0_85 = arith.constant 0 : index
      %c0_86 = arith.constant 0 : index
      %238 = vector.load %arg14[%c0_84, %c0_85, %c0_86] : memref<1x32x1xbf16, #tpu.memory_space<vmem>>, vector<1x32x1xbf16>
      %239 = vector.shape_cast %238 : vector<1x32x1xbf16> to vector<32x1xbf16>
      %cst_87 = arith.constant dense<0.000000e+00> : vector<16x1xf32>
      %240 = tpu.matmul %237, %239, %cst_87 {dimension_numbers = #tpu.dot_dimension_numbers<[1], [0], [0], [1], [0, 0, 1, 1], [], []>} : vector<16x32xbf16>, vector<32x1xbf16>, vector<16x1xf32> -> vector<16x1xf32>
      %c0_88 = arith.constant 0 : index
      %c0_89 = arith.constant 0 : index
      %c0_90 = arith.constant 0 : index
      %241 = vector.load %arg15[%c0_88, %c0_89, %c0_90] : memref<1x1x1xf32, #tpu.memory_space<vmem>>, vector<1x1x1xf32>
      %242 = vector.shape_cast %241 : vector<1x1x1xf32> to vector<1x1xf32>
      %243 = vector.broadcast %242 : vector<1x1xf32> to vector<16x1xf32>
      %244 = arith.addf %240, %243 : vector<16x1xf32>
      %245 = vector.shape_cast %244 : vector<16x1xf32> to vector<2x8x1xf32>
      %c0_91 = arith.constant 0 : index
      %c0_92 = arith.constant 0 : index
      %c0_93 = arith.constant 0 : index
      %c0_94 = arith.constant 0 : index
      %246 = vector.load %arg16[%c0_91, %c0_92, %c0_93, %c0_94] : memref<1x2x8x1xf32, #tpu.memory_space<vmem>>, vector<1x2x8x1xf32>
      %247 = vector.shape_cast %246 : vector<1x2x8x1xf32> to vector<2x8x1xf32>
      %248 = vector.shape_cast %245 : vector<2x8x1xf32> to vector<1x2x8x1xf32>
      tpu.vector_store %arg16[%c0_91, %c0_92, %c0_93, %c0_94], %248 {strides = array<i32>} : memref<1x2x8x1xf32, #tpu.memory_space<vmem>>, vector<1x2x8x1xf32>,
      %cst_95 = arith.constant 2.500000e-01 : f32
      %249 = vector.broadcast %cst_95 : f32 to vector<2x8x16xf32>
      %250 = arith.mulf %159, %249 : vector<2x8x16xf32>
      %c0_96 = arith.constant 0 : index
      %c0_97 = arith.constant 0 : index
      %c0_98 = arith.constant 0 : index
      %c0_99 = arith.constant 0 : index
      %251 = vector.load %arg17[%c0_96, %c0_97, %c0_98, %c0_99] : memref<1x2x8x16xf32, #tpu.memory_space<vmem>>, vector<1x2x8x16xf32>
      %252 = vector.shape_cast %251 : vector<1x2x8x16xf32> to vector<2x8x16xf32>
      %253 = vector.shape_cast %250 : vector<2x8x16xf32> to vector<1x2x8x16xf32>
      tpu.vector_store %arg17[%c0_96, %c0_97, %c0_98, %c0_99], %253 {strides = array<i32>} : memref<1x2x8x16xf32, #tpu.memory_space<vmem>>, vector<1x2x8x16xf32>,
    } else {
    }
    return
  }
  func.func @transform_0(%arg0: i32, %arg1: i32, %arg2: i32) -> (i32, i32, i32) {
    %c0_i32 = arith.constant 0 : i32
    %c0_i32_0 = arith.constant 0 : i32
    %c0_i32_1 = arith.constant 0 : i32
    return %arg0, %c0_i32, %c0_i32_0 : i32, i32, i32
  }
  func.func @transform_1(%arg0: i32, %arg1: i32, %arg2: i32) -> (i32, i32) {
    %c0_i32 = arith.constant 0 : i32
    %c0_i32_0 = arith.constant 0 : i32
    %c0_i32_1 = arith.constant 0 : i32
    return %c0_i32, %c0_i32_0 : i32, i32
  }
  func.func @transform_2(%arg0: i32, %arg1: i32, %arg2: i32) -> (i32, i32) {
    %c0_i32 = arith.constant 0 : i32
    %c0_i32_0 = arith.constant 0 : i32
    %c0_i32_1 = arith.constant 0 : i32
    return %c0_i32, %c0_i32_0 : i32, i32
  }
  func.func @transform_3(%arg0: i32, %arg1: i32, %arg2: i32) -> (i32, i32, i32) {
    %c0_i32 = arith.constant 0 : i32
    %c0_i32_0 = arith.constant 0 : i32
    %c0_i32_1 = arith.constant 0 : i32
    return %arg1, %c0_i32, %c0_i32_0 : i32, i32, i32
  }
  func.func @transform_4(%arg0: i32, %arg1: i32, %arg2: i32) -> (i32, i32, i32, i32) {
    %c0_i32 = arith.constant 0 : i32
    %c0_i32_0 = arith.constant 0 : i32
    %c0_i32_1 = arith.constant 0 : i32
    return %arg2, %arg1, %c0_i32, %c0_i32_0 : i32, i32, i32, i32
  }
  func.func @transform_5(%arg0: i32, %arg1: i32, %arg2: i32) -> (i32, i32, i32, i32) {
    %c0_i32 = arith.constant 0 : i32
    %c0_i32_0 = arith.constant 0 : i32
    %c0_i32_1 = arith.constant 0 : i32
    return %arg2, %arg1, %c0_i32, %c0_i32_0 : i32, i32, i32, i32
  }
  func.func @transform_6(%arg0: i32, %arg1: i32, %arg2: i32) -> (i32, i32, i32, i32) {
    %c0_i32 = arith.constant 0 : i32
    %c0_i32_0 = arith.constant 0 : i32
    %c0_i32_1 = arith.constant 0 : i32
    return %arg2, %arg1, %c0_i32, %c0_i32_0 : i32, i32, i32, i32
  }
  func.func @transform_7(%arg0: i32, %arg1: i32, %arg2: i32) -> (i32, i32, i32, i32) {
    %c0_i32 = arith.constant 0 : i32
    %c0_i32_0 = arith.constant 0 : i32
    %c0_i32_1 = arith.constant 0 : i32
    return %arg2, %arg1, %c0_i32, %c0_i32_0 : i32, i32, i32, i32
  }
  func.func @transform_8(%arg0: i32, %arg1: i32, %arg2: i32) -> (i32, i32, i32, i32) {
    %c0_i32 = arith.constant 0 : i32
    %c0_i32_0 = arith.constant 0 : i32
    %c0_i32_1 = arith.constant 0 : i32
    return %arg2, %arg1, %c0_i32, %c0_i32_0 : i32, i32, i32, i32
  }
  func.func @transform_9(%arg0: i32, %arg1: i32, %arg2: i32) -> (i32, i32, i32, i32) {
    %c0_i32 = arith.constant 0 : i32
    %c0_i32_0 = arith.constant 0 : i32
    %c0_i32_1 = arith.constant 0 : i32
    return %arg2, %arg1, %c0_i32, %c0_i32_0 : i32, i32, i32, i32
  }
  func.func @transform_10(%arg0: i32, %arg1: i32, %arg2: i32) -> (i32, i32, i32, i32) {
    %c0_i32 = arith.constant 0 : i32
    %c0_i32_0 = arith.constant 0 : i32
    %c0_i32_1 = arith.constant 0 : i32
    return %arg2, %arg1, %c0_i32, %c0_i32_0 : i32, i32, i32, i32
  }
  func.func @transform_11(%arg0: i32, %arg1: i32, %arg2: i32) -> (i32, i32, i32) {
    %c0_i32 = arith.constant 0 : i32
    %c0_i32_0 = arith.constant 0 : i32
    %c0_i32_1 = arith.constant 0 : i32
    return %arg1, %c0_i32, %c0_i32_0 : i32, i32, i32
  }
  func.func @transform_12(%arg0: i32, %arg1: i32, %arg2: i32) -> (i32, i32, i32) {
    %c0_i32 = arith.constant 0 : i32
    %c0_i32_0 = arith.constant 0 : i32
    %c0_i32_1 = arith.constant 0 : i32
    return %arg1, %c0_i32, %c0_i32_0 : i32, i32, i32
  }
  func.func @transform_13(%arg0: i32, %arg1: i32, %arg2: i32) -> (i32, i32, i32, i32) {
    %c0_i32 = arith.constant 0 : i32
    %c0_i32_0 = arith.constant 0 : i32
    %c0_i32_1 = arith.constant 0 : i32
    return %arg1, %arg0, %c0_i32, %c0_i32_0 : i32, i32, i32, i32
  }
  func.func @transform_14(%arg0: i32, %arg1: i32, %arg2: i32) -> (i32, i32, i32, i32) {
    %c0_i32 = arith.constant 0 : i32
    %c0_i32_0 = arith.constant 0 : i32
    %c0_i32_1 = arith.constant 0 : i32
    return %arg1, %arg0, %c0_i32, %c0_i32_0 : i32, i32, i32, i32
  }
}

</mosaic_0001>

<bundles_post_ra>
// kernel: tqn_model_ensemble_forward.1
= control target key start
LH: loop header
LB: loop body
LE: loop exit
PB: predicated region body
PF: predicated region fallthrough
CT: control target
= control target key end

     0   :  { %s4050_s0 = inlined_call_operand.vmem [shape: f32[2,16,32], index: 0, kind: input, shape index: {}]   ;;  %s4051_s1 = inlined_call_operand.vmem [shape: f32[8,32], index: 1, kind: input, shape index: {}]   ;;  %s4052_s2 = inlined_call_operand.vmem [shape: f32[2,32], index: 2, kind: input, shape index: {}]   ;;  %s4053_s3 = inlined_call_operand.hbm [shape: f32[3,2,32], index: 3, kind: input, shape index: {}]   ;;  %s4054_s4 = inlined_call_operand.vmem [shape: f32[4,3,6,32], index: 4, kind: input, shape index: {}]   ;;  %s4055_s5 = inlined_call_operand.vmem [shape: f32[4,3,1,96], index: 5, kind: input, shape index: {}]   ;;  %s4056_s6 = inlined_call_operand.vmem [shape: bf16[4,3,32,96], index: 6, kind: input, shape index: {}]   ;;  %s4057_s7 = inlined_call_operand.vmem [shape: bf16[4,3,32,32], index: 7, kind: input, shape index: {}]   ;;  %s4058_s8 = inlined_call_operand.vmem [shape: f32[4,3,1,64], index: 8, kind: input, shape index: {}]   ;;  %s4059_s9 = inlined_call_operand.vmem [shape: bf16[4,3,32,64], index: 9, kind: input, shape index: {}]   ;;  %s4060_s10 = inlined_call_operand.vmem [shape: bf16[4,3,64,32], index: 10, kind: input, shape index: {}]   ;;  %s4061_s11 = inlined_call_operand.vmem [shape: bf16[3,32,1], index: 11, kind: input, shape index: {}]   ;;  %s4062_s12 = inlined_call_operand.vmem [shape: f32[3,1,1], index: 12, kind: input, shape index: {}]   ;;  %s4063_s13 = inlined_call_operand.vmem [shape: f32[3,2,8,1], index: 13, kind: output, shape index: {0}]   ;;  %s4064_s14 = inlined_call_operand.vmem [shape: f32[3,2,8,16], index: 14, kind: output, shape index: {1}]  }
   0x1   :  { %4075 = sst [smem:[#allocation18_spill]] %s4050_s0 }
   0x2   :  { %4076 = sst [smem:[#allocation19_spill]] %s4051_s1 }
   0x3   :  { %4077 = sst [smem:[#allocation20_spill]] %s4052_s2 }
   0x4   :  { %4078 = sst [smem:[#allocation21_spill]] %s4053_s3 }
   0x5   :  { %4079 = sst [smem:[#allocation22_spill]] %s4054_s4 }
   0x6   :  { %4080 = sst [smem:[#allocation23_spill]] %s4056_s6 }
   0x7   :  { %4081 = sst [smem:[#allocation24_spill]] %s4057_s7 }
   0x8   :  { %4082 = sst [smem:[#allocation25_spill]] %s4060_s10 }
   0x9   :  { %4083 = sst [smem:[#allocation26_spill]] %s4063_s13 }
   0xa   :  { %4084 = sst [smem:[#allocation27_spill]] %s4064_s14 }
   0xb   :  { %20 = vsyncpa [#allocation5], 0 }
   0xc   :  { %22 = vsyncpa [#allocation5 + $0x1], 0  ;;  %s3467_s29 = smov 0   ;;  %s3469_s30 = smov 0  }
   0xd   :  { %s3471_s15 = smov 0   ;;  %s3473_s16 = smov 0  }
   0xe   :  { %s3475_s17 = smov 0   ;;  %s3477_s18 = smov 0  }
   0xf   :  { %s3479_s19 = smov 0   ;;  %s3481_s20 = smov 0  }
  0x10 LB: > { %4085 = sst [smem:[#allocation7_spill]] %s3351_s30  ;;  %s2842_s21 = sadd.s32 4294967295, %s3375_s20   ;;  %s3375_s20 = sphi %s3481_s20, %s28_s20   ;;  %s3371_s19 = sphi %s3479_s19, %s4128_s19   ;;  %s3367_s18 = sphi %s3477_s18, %s4127_s18   ;;  %s3363_s17 = sphi %s3475_s17, %s4126_s17   ;;  %s3359_s16 = sphi %s3473_s16, %s4125_s16   ;;  %s3355_s15 = sphi %s3471_s15, %s4124_s15   ;;  %s3351_s30 = sphi %s3469_s30, %s4123_s30   ;;  %s3347_s29 = sphi %s3467_s29, %s4122_s29  }
  0x11   : > { %4086 = sst [smem:[#allocation8_spill]] %s3355_s15  ;;  %s40_s22 = sadd.s32 1, %s3367_s18 }
  0x12   : > { %4087 = sst [smem:[#allocation9_spill]] %s3359_s16  ;;  %p41_p0 = scmp.ge.s32.totalorder %s40_s22, 4 }
  0x13   : > { %4088 = sst [smem:[#allocation10_spill]] %s3363_s17  ;;  %s43_s23 = sadd.s32 1, %s3371_s19 }
  0x14   : > { %4089 = sst [smem:[#allocation11_spill]] %s3367_s18  ;;  %s122_s24 = sadd.s32 1, %s3355_s15 }
  0x15   : > { %4090 = sst [smem:[#allocation12_spill]] %s3371_s19  ;;  %p129_p1 = scmp.ne.s32.totalorder %s3355_s15, %s3351_s30 }
  0x16   : > { %4091 = sst [smem:[#allocation13_spill]] %s3375_s20  ;;  %s4130_s22 = smov (%p41_p0, %s40_s22), 0 }
  0x17   : > { %4092 = sst [smem:[#allocation14_spill]] %s4130_s22  ;;  %s4132_s23 = smov (!%p41_p0, %s43_s23), %s3371_s19 }
  0x18   : > { %p130_p2 = scmp.eq.s32.totalorder %s3375_s20, 0  ;;  %p135_p3 = scmp.ne.s32.totalorder %s3351_s30, %s3347_s29 }
  0x19   : > { %p45_p4 = scmp.ge.s32.totalorder %s4132_s23, 3  ;;  %p136_p5 = scmp.eq.s32.totalorder %s2842_s21, 0 }
  0x1a   : > { %p3516_p6 = por %p130_p2, %p129_p1  ;;  %p3122_p8 = scmp.lt.s32.totalorder %s3375_s20, 12 }
  0x1b   : > { %s4134_s23 = smov (%p45_p4, %s4132_s23), 0  ;;  %p3522_p7 = por %p136_p5, %p135_p3 }
  0x1c   : > { %4094 = sst [smem:[#allocation15_spill]] %s4134_s23  ;;  %s119_s27 = ssub.s32 %s3371_s19, %s4134_s23 }
  0x1d   : > { %s479_s28 = sand.u32 1, %s3355_s15   ;;  %p120_p9 = scmp.eq.s32.totalorder %s119_s27, 0 }
  0x1e   : > { %s2847_s29 = sshll.u32 %s479_s28, 1  ;;  %s2848_s21 = sshll.u32 %s3371_s19, 5 }
  0x1f   : > { %s3532_s22 = scalar_select %p120_p9, %s3355_s15, %s122_s24  }
  0x20   : > { %s4097_s3 = sld [smem:[#allocation21_spill]]  ;;  %s483_s0 = scalar_lea.vmem [#allocation4], %s2847_s29 }
  0x21   : > { %4096 = sst [smem:[#allocation16_spill]] %s3532_s22  ;;  %s490_s14 = sshll.u32 %s483_s0, 4  ;;  %s3545_s14 = int_to_ptr.vmem [resolvable:$true] %s490_s14 }
  0x22   : > { %p3541_p10 = pnand %p3122_p8, %p3516_p6  ;;  %s480_s2 = scalar_lea.sflag [#allocation5], %s479_s28 }
  0x24   : > { %p3281_p0 = pneg %p3541_p10 }
  0x26   : > { %s3537_s1 = scalar_lea.hbm %s4097_s3, %s2848_s21  ;;  %s3284_s25 = scalar_lea.hbm %s4097_s3, 96 }
  0x27   : > { %s3279_s18 = scalar_lea.hbm %s3537_s1, 32  ;;  %p3285_p3 = scmp.lt.u32.totalorder %s3537_s1, %s4097_s3 }
  0x28   : > { %p3280_p13 = scmp.ne.s32.totalorder %s3537_s1, %s3279_s18  ;;  %p3286_p4 = scmp.lt.u32.totalorder %s3284_s25, %s3279_s18 }
  0x29   : > { %p3288_p6 = scmp.lt.u32.totalorder %s3279_s18, %s3537_s1 }
  0x2a   : > { %p3282_p1 = pnand %p3281_p0, %p3280_p13  ;;  %p3287_p5 = por %p3286_p4, %p3285_p3 }
  0x2c   : > { %p3283_p2 = pneg %p3282_p1  ;;  %p3289_p8 = por %p3288_p6, %p3287_p5 }
  0x2e   : > { %p3290_p9 = pnand %p3289_p8, %p3283_p2 }
  0x30   : > { %3293 = shalt.err (!%p3290_p9)
}
  0x31   : > { %s3294_s28 = scalar_lea.vmem %s3545_s14, 32  ;;  %s3377_s21 = smov [#allocation4]  }
  0x32   : > { %p3295_p13 = scmp.ne.s32.totalorder %s3545_s14, %s3294_s28  ;;  %s3299_s0 = sshll.u32 %s3377_s21, 4  ;;  %s3300_s0 = int_to_ptr.vmem [resolvable:$false] %s3299_s0 }
  0x33   : > { %s3301_s24 = scalar_lea.vmem %s3300_s0, 64  ;;  %p3302_p12 = scmp.lt.s32.totalorder %s3545_s14, %s3300_s0 }
  0x34   : > { %p3297_p1 = pnand %p3295_p13, %p3281_p0  ;;  %p3303_p3 = scmp.lt.s32.totalorder %s3301_s24, %s3294_s28 }
  0x36   : > { %p3298_p11 = pneg %p3297_p1  ;;  %p3304_p4 = por %p3303_p3, %p3302_p12 }
  0x38   : > { %p3305_p5 = pnand %p3304_p4, %p3298_p11 }
  0x3a   : > { %3308 = shalt.err (!%p3305_p5)
}
  0x3b   : > { %3121 = dma.hbm_to_vmem [thread:$0]  (!%p3541_p10), %s3537_s1, 32, %s3545_s14, %s480_s2  }
  0x3c   : > { %p4099_p2 = scmp.lt.s32.totalorder %s3375_s20, 13  ;;  %p4100_p6 = scmp.ge.s32.totalorder %s3375_s20, 1 }
  0x3e   : > { %p589_p0 = pnand %p4100_p6, %p4099_p2 }
  0x40   : > { %592 = sbr.rel (%p589_p0) target bundleno = 5310 (0x14be), region = 72 }
  0x47   : > { %s594_s18 = sand.u32 1, %s3351_s30  }
  0x48   : > { %s3579_s25 = sshll.u32 %s594_s18, 1  ;;  %s595_s27 = scalar_lea.sflag [#allocation5], %s594_s18 }
  0x49   : > { %4101 = sst [smem:[#allocation17_spill]] %s3579_s25 }
  0x4a   : > { %3342 = dma.done.wait (%p3522_p7), %s595_s27, 32  }
  0x4b   : > { %3344 = vsyncadd (%p3522_p7), %s595_s27, 4294967264  ;;  %p735_p10 = scmp.lt.s32.totalorder %s3359_s16, 3  ;;  %p737_p11 = scmp.lt.s32.totalorder %s3363_s17, 2 }
  0x4c   : > { %p822_p12 = scmp.eq.s32.totalorder %s3359_s16, 0  ;;  %s4102_s4 = sld [smem:[#allocation22_spill]] }
  0x4d   : > { %s736_s1 = scalar_select %p735_p10, %s3359_s16, 3 }
  0x4e   : > { %s3591_s14 = scalar_select %p737_p11, %s3363_s17, 2 }
  0x4f   : > { %s3113_s23 = smul.u32 3, %s736_s1  ;;  %s4103_s6 = sld [smem:[#allocation23_spill]] }
  0x50   : > { %s2852_s2 = sshll.u32 %s3591_s14, 2  ;;  %s3114_s26 = smul.u32 12, %s736_s1 }
  0x51   : > { %s3595_s28 = sadd.s32 %s3113_s23, %s3591_s14  ;;  %s2858_s21 = sshll.u32 %s3591_s14, 3 }
  0x52   : > { %s2851_s0 = sshll.u32 %s3595_s28, 3  ;;  %s756_s22 = sadd.s32 %s3114_s26, %s2852_s2 }
  0x53   : > { %s3606_s19 = scalar_lea.vmem %s4102_s4, %s2851_s0  ;;  %s2853_s15 = sshll.u32 %s756_s22, 2 }
  0x54   : > { %s4104_s7 = sld [smem:[#allocation24_spill]]  ;;  %s3625_s29 = scalar_lea.vmem %s4059_s9, %s2853_s15 }
  0x55   : > { %s3615_s16 = scalar_lea.vmem %s4103_s6, %s2853_s15  ;;  %s3115_s22 = smul.u32 24, %s736_s1 }
  0x56   : > { %s2909_s2 = sshll.u32 %s3591_s14, 4  ;;  %s800_s20 = scalar_lea.vmem %s4062_s12, %s3591_s14 }
  0x57   : > { %s790_s0 = sadd.s32 %s3115_s22, %s2858_s21  ;;  %s3635_s23 = scalar_lea.vmem %s4061_s11, %s2909_s2 }
  0x58   : > { %s2859_s10 = sshll.u32 %s790_s0, 2  ;;  %s4105_s4 = sld [smem:[#allocation26_spill]] }
  0x59   : > { %s4106_s1 = sld [smem:[#allocation25_spill]]  ;;  %s4107_s30 = sld [smem:[#allocation27_spill]] }
  0x5a   : > { %s3620_s24 = scalar_lea.vmem %s4104_s7, %s2853_s15  ;;  %s4108_s22 = sld [smem:[#allocation9_spill]] }
  0x5e   : > { %s3640_s6 = scalar_lea.vmem %s4105_s4, %s2909_s2 }
  0x5f   : > { %s3645_s3 = scalar_lea.vmem %s4106_s1, %s2859_s10  ;;  %s3650_s21 = scalar_lea.vmem %s4107_s30, %s2909_s2 }
  0x60   : > { %p2866_p7 = scmp.ne.s32.totalorder %s4108_s22, 0 }
  0x61   : > { %s4109_s25 = sld [smem:[#allocation18_spill]] (!%p2866_p7)  ;;  %vm831_vm0 = vcmask (!%p2866_p7), 261120   ;;  %s4110_s1 = sld [smem:[#allocation19_spill]] (!%p2866_p7)  ;;  %v885_v37 = vlaneseq (!%p2866_p7) }
  0x62   : > { %825 = sbr.rel (%p2866_p7) target bundleno = 427 (0x1ab), region = 80  ;;  %s4111_s22 = sld [smem:[#allocation20_spill]] (!%p2866_p7) }
  0x63   : > { %v886_v43 = vshrl.u32 (!%p2866_p7), %v885_v37, 7 }
  0x65   : > { %v887_v50 = vsub.s32 (!%p2866_p7), 0, %v886_v43  ;;  %v895_v54 = vsub.s32 (!%p2866_p7), 1, %v886_v43 }
  0x67   : > { %v827_v0 = vld [vmem:[%s4109_s25] sm:$0xff] (!%p2866_p7)  ;;  %v829_v1 = vld [vmem:[%s4109_s25 + $0x10] sm:$0xff] (!%p2866_p7)  ;;  %v828_v2 = vld [vmem:[%s4109_s25 + $0x8] sm:$0xff] (!%p2866_p7) }
  0x68   : > { %v832_v3 = vsel (!%p2866_p7), %vm831_vm0, %v827_v0, 0.0  ;;  %v838_v4 = vsel (!%p2866_p7), %vm831_vm0, %v829_v1, 0.0  ;;  %v830_v5 = vld [vmem:[%s4109_s25 + $0x18] sm:$0xff] (!%p2866_p7)  ;;  %v835_v6 = vsel (!%p2866_p7), %vm831_vm0, %v828_v2, 0.0  ;;  %v905_v8 = vld [vmem:[%s4110_s1] sm:$0xff] (!%p2866_p7) }
  0x69   : > { %833 = vadd.xlane.f32.xlu0 %v832_v3  ;;  %839 = vadd.xlane.f32.xlu1 %v838_v4  ;;  %v841_v7 = vsel %vm831_vm0, %v830_v5, 0.0  ;;  %v906_v9 = vsel %vm831_vm0, %v905_v8, 0.0  ;;  %v826_v51 = vld [vmem:[%s4111_s22] sm:$0x3] }
  0x6a   : > { %v888_v55 = vrot.slane %v826_v51, %v887_v50  ;;  %v896_v58 = vrot.slane %v826_v51, %v895_v54 }
  0x6d   : > { %836 = vadd.xlane.f32.xlu0 %v835_v6  ;;  %842 = vadd.xlane.f32.xlu1 %v841_v7 }
  0x71   : > { %907 = vadd.xlane.f32.xlu0 %v906_v9 }
  0xf6   : > { %v834_v10 = vpop.xlane.xlu0 %833  ;;  %v840_v11 = vpop.xlane.xlu1 %839 }
  0xf7   : > { %v845_v12 = vmul.f32 0.03125, %v834_v10  ;;  %v847_v13 = vmul.f32 0.03125, %v840_v11 }
  0xf9   : > { %v849_v14 = vsub.f32 %v827_v0, %v845_v12  ;;  %v851_v15 = vsub.f32 %v829_v1, %v847_v13 }
  0xfa   : > { %v837_v16 = vpop.xlane.xlu0 %836  ;;  %v843_v17 = vpop.xlane.xlu1 %842 }
  0xfb   : > { %v846_v18 = vmul.f32 0.03125, %v837_v16  ;;  %v848_v19 = vmul.f32 0.03125, %v843_v17  ;;  %v853_v20 = vmul.f32 %v849_v14, %v849_v14  ;;  %v855_v21 = vmul.f32 %v851_v15, %v851_v15 }
  0xfd   : > { %v850_v22 = vsub.f32 %v828_v2, %v846_v18  ;;  %v852_v23 = vsub.f32 %v830_v5, %v848_v19  ;;  %v857_v24 = vsel %vm831_vm0, %v853_v20, 0.0  ;;  %v863_v27 = vsel %vm831_vm0, %v855_v21, 0.0 }
  0xfe   : > { %858 = vadd.xlane.f32.xlu1 %v857_v24  ;;  %v908_v25 = vpop.xlane.xlu0 %907 }
  0xff   : > { %v909_v26 = vmul.f32 0.03125, %v908_v25  ;;  %v854_v28 = vmul.f32 %v850_v22, %v850_v22  ;;  %v856_v29 = vmul.f32 %v852_v23, %v852_v23 }
 0x101   : > { %v910_v30 = vsub.f32 %v905_v8, %v909_v26  ;;  %v860_v31 = vsel %vm831_vm0, %v854_v28, 0.0  ;;  %v866_v32 = vsel %vm831_vm0, %v856_v29, 0.0 }
 0x102   : > { %864 = vadd.xlane.f32.xlu1 %v863_v27  ;;  %861 = vadd.xlane.f32.xlu0 %v860_v31 }
 0x103   : > { %v911_v33 = vmul.f32 %v910_v30, %v910_v30 }
 0x105   : > { %v912_v34 = vsel %vm831_vm0, %v911_v33, 0.0 }
 0x106   : > { %867 = vadd.xlane.f32.xlu0 %v866_v32  ;;  %913 = vadd.xlane.f32.xlu1 %v912_v34 }
 0x18b   : > { %v859_v35 = vpop.xlane.xlu1 %858 }
 0x18c   : > { %v869_v36 = vmul.f32 0.03125, %v859_v35 }
 0x18e   : > { %v873_v38 = vadd.f32 1e-05, %v869_v36 }
 0x18f   : > { %v865_v39 = vpop.xlane.xlu1 %864  ;;  %v862_v40 = vpop.xlane.xlu0 %861 }
 0x190   : > { %3201 = vrsqrt.f32 %v873_v38  ;;  %v871_v41 = vmul.f32 0.03125, %v865_v39  ;;  %v870_v42 = vmul.f32 0.03125, %v862_v40 }
 0x192   : > { %v875_v44 = vadd.f32 1e-05, %v871_v41  ;;  %v874_v45 = vadd.f32 1e-05, %v870_v42 }
 0x193   : > { %v914_v46 = vpop.xlane.xlu1 %913  ;;  %v868_v47 = vpop.xlane.xlu0 %867 }
 0x194   : > { %3203 = vrsqrt.f32 %v875_v44  ;;  %v915_v48 = vmul.f32 0.03125, %v914_v46  ;;  %v872_v49 = vmul.f32 0.03125, %v868_v47 }
 0x195   : > { %3205 = vrsqrt.f32 %v874_v45 }
 0x196   : > { %v916_v52 = vadd.f32 1e-05, %v915_v48  ;;  %v876_v53 = vadd.f32 1e-05, %v872_v49 }
 0x198   : > { %3207 = vrsqrt.f32 %v916_v52 }
 0x199   : > { %3209 = vrsqrt.f32 %v876_v53 }
 0x19a   : > { %v3202_v56 = vpop.eup %3201 }
 0x19b   : > { %v881_v57 = vmul.f32 %v3202_v56, %v849_v14 }
 0x19d   : > { %v889_v59 = vmul.f32 %v888_v55, %v881_v57 }
 0x19e   : > { %v3204_v60 = vpop.eup %3203 }
 0x19f   : > { %v3206_v61 = vpop.eup %3205  ;;  %v897_v62 = vadd.f32 %v896_v58, %v889_v59  ;;  %v883_v63 = vmul.f32 %v3204_v60, %v851_v15 }
 0x1a0   : > { %v882_v0 = vmul.f32 %v3206_v61, %v850_v22 }
 0x1a1   : > { %901 = vst.msk [vmem:[#allocation3] sm:$0xff] %vm831_vm0, %v897_v62  ;;  %v891_v1 = vmul.f32 %v888_v55, %v883_v63 }
 0x1a2   : > { %v3208_v2 = vpop.eup %3207  ;;  %v890_v3 = vmul.f32 %v888_v55, %v882_v0 }
 0x1a3   : > { %v3210_v4 = vpop.eup %3209  ;;  %v899_v5 = vadd.f32 %v896_v58, %v891_v1  ;;  %v918_v6 = vmul.f32 %v3208_v2, %v910_v30 }
 0x1a4   : > { %v898_v7 = vadd.f32 %v896_v58, %v890_v3  ;;  %v884_v8 = vmul.f32 %v3210_v4, %v852_v23 }
 0x1a5   : > { %903 = vst.msk [vmem:[#allocation3 + $0x10] sm:$0xff] %vm831_vm0, %v899_v5  ;;  %v919_v9 = vmul.f32 %v918_v6, %v888_v55 }
 0x1a6   : > { %902 = vst.msk [vmem:[#allocation3 + $0x8] sm:$0xff] %vm831_vm0, %v898_v7  ;;  %v892_v10 = vmul.f32 %v888_v55, %v884_v8 }
 0x1a7   : > { %v920_v11 = vadd.f32 %v919_v9, %v896_v58 }
 0x1a8   : > { %v900_v12 = vadd.f32 %v896_v58, %v892_v10 }
 0x1a9   : > { %921 = vst.msk [vmem:[#allocation2] sm:$0xff] %vm831_vm0, %v920_v11  ;;  %922 = vst.msk [vmem:[#allocation2 + $0x8] sm:$0xff] %vm831_vm0, %v920_v11 }
 0x1aa   : > { %904 = vst.msk [vmem:[#allocation3 + $0x18] sm:$0xff] %vm831_vm0, %v900_v12 }
 0x1ab PF: > { %s4112_s17 = sld [smem:[#allocation10_spill]] }
 0x1b1   : > { %p923_p8 = scmp.gt.s32.totalorder %s4112_s17, 0 }
 0x1b3   : > { %p924_p9 = pnand %p923_p8, %p822_p12 }
 0x1b4   : > { %v929_v13 = vld [vmem:[#allocation3] sm:$0xff] (!%p924_p9)  ;;  %vm933_vm1 = vcmask (!%p924_p9), 261120   ;;  %v931_v14 = vld [vmem:[#allocation3 + $0x10] sm:$0xff] (!%p924_p9)  ;;  %v930_v15 = vld [vmem:[#allocation3 + $0x8] sm:$0xff] (!%p924_p9)  ;;  %v987_v57 = vlaneseq (!%p924_p9)  ;;  %s4114_s4 = sld [smem:[#allocation17_spill]] (!%p924_p9) }
 0x1b5   : > { %927 = sbr.rel (%p924_p9) target bundleno = 763 (0x2fb), region = 84  ;;  %v934_v16 = vsel (!%p924_p9), %vm933_vm1, %v929_v13, 0.0  ;;  %v940_v17 = vsel (!%p924_p9), %vm933_vm1, %v931_v14, 0.0  ;;  %v932_v18 = vld [vmem:[#allocation3 + $0x18] sm:$0xff] (!%p924_p9)  ;;  %v937_v19 = vsel (!%p924_p9), %vm933_vm1, %v930_v15, 0.0  ;;  %v1007_v21 = vld [vmem:[#allocation2] sm:$0xff] (!%p924_p9) }
 0x1b6   : > { %935 = vadd.xlane.f32.xlu0 (!%p924_p9), %v934_v16  ;;  %941 = vadd.xlane.f32.xlu1 (!%p924_p9), %v940_v17  ;;  %v943_v20 = vsel (!%p924_p9), %vm933_vm1, %v932_v18, 0.0  ;;  %v1008_v22 = vld [vmem:[#allocation2 + $0x8] sm:$0xff] (!%p924_p9)  ;;  %v1009_v23 = vsel (!%p924_p9), %vm933_vm1, %v1007_v21, 0.0  ;;  %v988_v63 = vshrl.u32 (!%p924_p9), %v987_v57, 7 }
 0x1b7   : > { %v1012_v24 = vsel (!%p924_p9), %vm933_vm1, %v1008_v22, 0.0 }
 0x1b8   : > { %v989_v6 = vsub.s32 (!%p924_p9), 0, %v988_v63  ;;  %v997_v10 = vsub.s32 (!%p924_p9), 1, %v988_v63 }
 0x1ba   : > { %938 = vadd.xlane.f32.xlu0 (!%p924_p9), %v937_v19  ;;  %944 = vadd.xlane.f32.xlu1 (!%p924_p9), %v943_v20  ;;  %s4115_s27 = scalar_lea.vmem (!%p924_p9), [#allocation4], %s4114_s4 }
 0x1bb   : > { %v928_v7 = vld [vmem:[%s4115_s27] sm:$0x3] (!%p924_p9) }
 0x1bc   : > { %v998_v17 = vrot.slane %v928_v7, %v997_v10 }
 0x1be   : > { %1010 = vadd.xlane.f32.xlu0 %v1009_v23  ;;  %1013 = vadd.xlane.f32.xlu1 %v1012_v24 }
 0x243   : > { %v936_v25 = vpop.xlane.xlu0 %935  ;;  %v942_v26 = vpop.xlane.xlu1 %941 }
 0x244   : > { %v947_v27 = vmul.f32 0.03125, %v936_v25  ;;  %v949_v28 = vmul.f32 0.03125, %v942_v26 }
 0x246   : > { %v951_v29 = vsub.f32 %v929_v13, %v947_v27  ;;  %v3696_v30 = vsub.f32 %v931_v14, %v949_v28  ;;  %v990_v13 = vrot.slane %v928_v7, %v989_v6 }
 0x247   : > { %v939_v31 = vpop.xlane.xlu0 %938  ;;  %v945_v32 = vpop.xlane.xlu1 %944 }
 0x248   : > { %v948_v33 = vmul.f32 0.03125, %v939_v31  ;;  %v950_v34 = vmul.f32 0.03125, %v945_v32  ;;  %v955_v35 = vmul.f32 %v951_v29, %v951_v29  ;;  %v957_v36 = vmul.f32 %v3696_v30, %v3696_v30 }
 0x24a   : > { %v952_v37 = vsub.f32 %v930_v15, %v948_v33  ;;  %v3700_v38 = vsub.f32 %v932_v18, %v950_v34  ;;  %v959_v39 = vsel %vm933_vm1, %v955_v35, 0.0  ;;  %v965_v42 = vsel %vm933_vm1, %v957_v36, 0.0 }
 0x24b   : > { %960 = vadd.xlane.f32.xlu0 %v959_v39  ;;  %v1011_v40 = vpop.xlane.xlu0 %1010  ;;  %v1014_v41 = vpop.xlane.xlu1 %1013 }
 0x24c   : > { %v1015_v43 = vmul.f32 0.03125, %v1011_v40  ;;  %v1016_v44 = vmul.f32 0.03125, %v1014_v41  ;;  %v956_v45 = vmul.f32 %v952_v37, %v952_v37  ;;  %v958_v46 = vmul.f32 %v3700_v38, %v3700_v38 }
 0x24e   : > { %v1017_v47 = vsub.f32 %v1007_v21, %v1015_v43  ;;  %v3706_v48 = vsub.f32 %v1008_v22, %v1016_v44  ;;  %v962_v49 = vsel %vm933_vm1, %v956_v45, 0.0  ;;  %v968_v50 = vsel %vm933_vm1, %v958_v46, 0.0 }
 0x24f   : > { %966 = vadd.xlane.f32.xlu0 %v965_v42  ;;  %963 = vadd.xlane.f32.xlu1 %v962_v49 }
 0x250   : > { %v1019_v51 = vmul.f32 %v1017_v47, %v1017_v47  ;;  %v1020_v52 = vmul.f32 %v3706_v48, %v3706_v48 }
 0x252   : > { %v1021_v53 = vsel %vm933_vm1, %v1019_v51, 0.0  ;;  %v1024_v54 = vsel %vm933_vm1, %v1020_v52, 0.0 }
 0x253   : > { %969 = vadd.xlane.f32.xlu1 %v968_v50  ;;  %1022 = vadd.xlane.f32.xlu0 %v1021_v53 }
 0x257   : > { %1025 = vadd.xlane.f32.xlu1 %v1024_v54 }
 0x2d8   : > { %v961_v55 = vpop.xlane.xlu0 %960 }
 0x2d9   : > { %v971_v56 = vmul.f32 0.03125, %v961_v55 }
 0x2db   : > { %v975_v58 = vadd.f32 1e-05, %v971_v56 }
 0x2dc   : > { %v964_v59 = vpop.xlane.xlu1 %963  ;;  %v967_v60 = vpop.xlane.xlu0 %966 }
 0x2dd   : > { %3211 = vrsqrt.f32 %v975_v58  ;;  %v972_v61 = vmul.f32 0.03125, %v964_v59  ;;  %v973_v62 = vmul.f32 0.03125, %v967_v60 }
 0x2df   : > { %v976_v0 = vadd.f32 1e-05, %v972_v61  ;;  %v977_v1 = vadd.f32 1e-05, %v973_v62 }
 0x2e0   : > { %v970_v2 = vpop.xlane.xlu1 %969  ;;  %v1023_v3 = vpop.xlane.xlu0 %1022 }
 0x2e1   : > { %3213 = vrsqrt.f32 %v976_v0  ;;  %v974_v4 = vmul.f32 0.03125, %v970_v2  ;;  %v1027_v5 = vmul.f32 0.03125, %v1023_v3 }
 0x2e2   : > { %3215 = vrsqrt.f32 %v977_v1 }
 0x2e3   : > { %v978_v8 = vadd.f32 1e-05, %v974_v4  ;;  %v1029_v9 = vadd.f32 1e-05, %v1027_v5 }
 0x2e4   : > { %v1026_v11 = vpop.xlane.xlu1 %1025 }
 0x2e5   : > { %3217 = vrsqrt.f32 %v978_v8  ;;  %v1028_v12 = vmul.f32 0.03125, %v1026_v11 }
 0x2e6   : > { %3219 = vrsqrt.f32 %v1029_v9 }
 0x2e7   : > { %v3212_v14 = vpop.eup %3211  ;;  %v1030_v15 = vadd.f32 1e-05, %v1028_v12 }
 0x2e8   : > { %v983_v16 = vmul.f32 %v3212_v14, %v951_v29 }
 0x2e9   : > { %3221 = vrsqrt.f32 %v1030_v15 }
 0x2ea   : > { %v991_v18 = vmul.f32 %v990_v13, %v983_v16 }
 0x2eb   : > { %v3214_v19 = vpop.eup %3213 }
 0x2ec   : > { %v3216_v20 = vpop.eup %3215  ;;  %v999_v21 = vadd.f32 %v998_v17, %v991_v18  ;;  %v984_v22 = vmul.f32 %v3214_v19, %v952_v37 }
 0x2ed   : > { %v985_v23 = vmul.f32 %v3216_v20, %v3696_v30 }
 0x2ee   : > { %1003 = vst.msk [vmem:[#allocation3] sm:$0xff] %vm933_vm1, %v999_v21  ;;  %v992_v24 = vmul.f32 %v990_v13, %v984_v22 }
 0x2ef   : > { %v3218_v25 = vpop.eup %3217  ;;  %v993_v26 = vmul.f32 %v990_v13, %v985_v23 }
 0x2f0   : > { %v3220_v27 = vpop.eup %3219  ;;  %v1000_v28 = vadd.f32 %v998_v17, %v992_v24  ;;  %v986_v31 = vmul.f32 %v3218_v25, %v3700_v38 }
 0x2f1   : > { %v1001_v32 = vadd.f32 %v998_v17, %v993_v26  ;;  %v1033_v29 = vmul.f32 %v3220_v27, %v1017_v47 }
 0x2f2   : > { %1004 = vst.msk [vmem:[#allocation3 + $0x8] sm:$0xff] %vm933_vm1, %v1000_v28  ;;  %v994_v33 = vmul.f32 %v990_v13, %v986_v31 }
 0x2f3   : > { %v3222_v34 = vpop.eup %3221  ;;  %1005 = vst.msk [vmem:[#allocation3 + $0x10] sm:$0xff] %vm933_vm1, %v1001_v32  ;;  %v1035_v35 = vmul.f32 %v1033_v29, %v990_v13 }
 0x2f4   : > { %v1002_v36 = vadd.f32 %v998_v17, %v994_v33  ;;  %v1034_v30 = vmul.f32 %v3222_v34, %v3706_v48 }
 0x2f5   : > { %v1037_v37 = vadd.f32 %v1035_v35, %v998_v17 }
 0x2f6   : > { %1006 = vst.msk [vmem:[#allocation3 + $0x18] sm:$0xff] %vm933_vm1, %v1002_v36  ;;  %v1036_v39 = vmul.f32 %v1034_v30, %v990_v13 }
 0x2f7   : > { %1039 = vst.msk [vmem:[#allocation2] sm:$0xff] %vm933_vm1, %v1037_v37 }
 0x2f8   : > { %v1038_v40 = vadd.f32 %v1036_v39, %v998_v17 }
 0x2fa   : > { %1040 = vst.msk [vmem:[#allocation2 + $0x8] sm:$0xff] %vm933_vm1, %v1038_v40 }
 0x2fb PF: > { %vm1070_vm2 = vcmask 261120   ;;  %v3223_v44 = vld [vmem:[%s3615_s16] sm:$0xff]   ;;  %s3378_s13 = smov 96   ;;  %v3224_v55 = vld [vmem:[%s3615_s16 + $0x8] sm:$0xff]   ;;  %v3379_v56 = vmov 0.0   ;;  %vm3380_vm3 = vmmov 0   ;;  %s4116_s7 = scalar_lea.vmem %s4055_s5, %s3595_s28  ;;  %v1098_v63 = vlaneseq }
 0x2fc   : > { %2965 = vmatprep.subr.bf16.mxu1 %v3379_v56  ;;  %2981 = vmatprep.subr.bf16.mxu0 %v3379_v56  ;;  %v3753_v58 = vld [vmem:[%s4116_s7] ss:$0 sm:$0xff]  ;;  %v1066_v14 = vld [vmem:[#allocation3] sm:$0xff]  ;;  %v1067_v15 = vld [vmem:[#allocation3 + $0x8] sm:$0xff]  ;;  %vm1243_vm4 = vcmask 64512   ;;  %vm1338_vm5 = vcmask 130048   ;;  %s4117_s0 = scalar_lea.vmem %s4058_s8, %s3595_s28 }
 0x2fd   : > { %2966 = vmatpush3.bf16.msra.mxu1 %v3223_v44  ;;  %2969 = vmatprep.mubr.msk.bf16.mxu1 %vm3380_vm3, %v3379_v56  ;;  %v3757_v2 = vshrl.u32 %v1098_v63, 7  ;;  %v3761_v4 = vld [vmem:[%s3606_s19] sm:$0x3f]  ;;  %v1173_v18 = vpack.c.bf16 %v1067_v15, %v1066_v14  ;;  %v1069_v22 = vld [vmem:[#allocation3 + $0x18] sm:$0xff]  ;;  %s3381_s19 = smov 120   ;;  %s3382_s2 = smov 88  }
 0x2fe   : > { %v3725_v38 = vld [vmem:[#allocation2] sm:$0xff]  ;;  %2967 = vmatprep.subr.bf16.mxu1 %v3379_v56  ;;  %2983 = vmatprep.mubr.msk.bf16.mxu0 %vm3380_vm3, %v3379_v56  ;;  %s3383_s15 = smov 112   ;;  %s3384_s18 = smov 80   ;;  %vm2155_vm6 = vcmask 195584   ;;  %vm2359_vm7 = vcmask 523264  }
 0x2ff   : > { %v1071_v42 = vsel %vm1070_vm2, %v3725_v38, 0.0  ;;  %v1100_v3 = vsub.s32 0, %v3757_v2  ;;  %v1106_v8 = vsub.s32 1, %v3757_v2  ;;  %v1068_v21 = vld [vmem:[#allocation3 + $0x10] sm:$0xff]  ;;  %s3385_s1 = smov 104   ;;  %s3386_s26 = smov 72  }
 0x300   : > { %1072 = vadd.xlane.f32.xlu0 %v1071_v42  ;;  %v1174_v23 = vpack.c.bf16 %v1069_v22, %v1068_v21  ;;  %s3387_s30 = smov 8   ;;  %s3388_s22 = smov 16  }
 0x301   : > { %v3727_v41 = vld [vmem:[#allocation2 + $0x8] sm:$0xff]  ;;  %2968 = vmatpush3.bf16.msra.mxu1 %v3224_v55  ;;  %v1101_v7 = vrot.slane %v3761_v4, %v1100_v3  ;;  %v1107_v12 = vrot.slane %v3761_v4, %v1106_v8  ;;  %s3389_s17 = smov 24   ;;  %s4118_s28 = sld [smem:[#allocation9_spill]] }
 0x302   : > { %v1074_v43 = vsel %vm1070_vm2, %v3727_v41, 0.0 }
 0x304   : > { %1075 = vadd.xlane.f32.xlu0 %v1074_v43 }
 0x307   : > { %p2902_p13 = scmp.ne.s32.totalorder %s4118_s28, 3 }
 0x308   : > { %vm3391_vm8 = vmmov (!%p2902_p13), 0   ;;  %vm2519_vm9 = vcmask (!%p2902_p13), 7168  }
 0x31a   : > { %1175 = vrot.lane.b32.xlu0 %v3223_v44, %s3378_s13 }
 0x38d   : > { %v1073_v45 = vpop.xlane.xlu0 %1072 }
 0x38e   : > { %v1078_v46 = vmul.f32 0.03125, %v1073_v45 }
 0x390   : > { %v1080_v47 = vsub.f32 %v3725_v38, %v1078_v46 }
 0x391   : > { %v1076_v48 = vpop.xlane.xlu0 %1075 }
 0x392   : > { %v1079_v49 = vmul.f32 0.03125, %v1076_v48  ;;  %v1082_v50 = vmul.f32 %v1080_v47, %v1080_v47 }
 0x394   : > { %v1081_v51 = vsub.f32 %v3727_v41, %v1079_v49  ;;  %v1084_v52 = vsel %vm1070_vm2, %v1082_v50, 0.0 }
 0x395   : > { %1085 = vadd.xlane.f32.xlu1 %v1084_v52  ;;  %v1176_v57 = vpop.permute.xlu0 %1175 }
 0x396   : > { %v1083_v53 = vmul.f32 %v1081_v51, %v1081_v51  ;;  %2973 = vmatprep.subr.bf16.mxu1 %v1176_v57 }
 0x398   : > { %v1087_v54 = vsel %vm1070_vm2, %v1083_v53, 0.0 }
 0x399   : > { %1088 = vadd.xlane.f32.xlu1 %v1087_v54 }
 0x3aa   : > { %1177 = vrot.lane.b32.xlu1 %v3224_v55, %s3378_s13 }
 0x3ae   : > { %1181 = vrot.lane.b32.xlu1 %v3753_v58, %s3378_s13 }
 0x422   : > { %v1086_v59 = vpop.xlane.xlu1 %1085 }
 0x423   : > { %v1090_v60 = vmul.f32 0.03125, %v1086_v59 }
 0x425   : > { %v1092_v61 = vadd.f32 1e-05, %v1090_v60 }
 0x426   : > { %v1089_v62 = vpop.xlane.xlu1 %1088 }
 0x427   : > { %3233 = vrsqrt.f32 %v1092_v61  ;;  %v1091_v0 = vmul.f32 0.03125, %v1089_v62 }
 0x429   : > { %v1093_v1 = vadd.f32 1e-05, %v1091_v0 }
 0x42a   : > { %v1178_v20 = vpop.permute.xlu1 %1177 }
 0x42b   : > { %3235 = vrsqrt.f32 %v1093_v1 }
 0x42e   : > { %v1182_v28 = vpop.permute.xlu1 %1181 }
 0x431   : > { %v3234_v5 = vpop.eup %3233 }
 0x432   : > { %v1096_v6 = vmul.f32 %v3234_v5, %v1080_v47 }
 0x434   : > { %v1102_v11 = vmul.f32 %v1101_v7, %v1096_v6 }
 0x435   : > { %v3236_v9 = vpop.eup %3235 }
 0x436   : > { %v1097_v10 = vmul.f32 %v3236_v9, %v1081_v51  ;;  %v1108_v16 = vadd.f32 %v1107_v12, %v1102_v11 }
 0x438   : > { %v1103_v13 = vmul.f32 %v1101_v7, %v1097_v10 }
 0x43a   : > { %v1109_v17 = vadd.f32 %v1107_v12, %v1103_v13 }
 0x43c   : > { %v1110_v19 = vpack.c.bf16 %v1109_v17, %v1108_v16 }
 0x43e   : > { %2970 = vmatmul.mubr.msk.bf16.vlgmr.msra.gmra.mrb[0].mxu1 %vm1070_vm2, %v1110_v19 }
 0x43f   : > { %2974 = vmatpush3.bf16.msra.mxu1 %v1176_v57  ;;  %2977 = vmatprep.mubr.msk.bf16.mxu1 %vm1070_vm2, %v1173_v18 }
 0x440   : > { %2975 = vmatprep.subr.bf16.mxu1 %v1178_v20 }
 0x443   : > { %2976 = vmatpush3.bf16.msra.mxu1 %v1178_v20 }
 0x444   : > { %2987 = vmatprep.subr.bf16.mxu1 %v3379_v56 }
 0x446   : > { %2978 = vmatmul.mubr.msk.bf16.vlgmr.msra.gmra.mrb[4].mxu1 %vm1070_vm2, %v1174_v23 }
 0x447   : > { %2989 = vmatprep.mubr.msk.bf16.mxu1 %vm3380_vm3, %v3379_v56 }
 0x511   : > { %v1166_v24 = vpop.f32.mrb[0].mxu1 }
 0x512   : > { %v2971_v25 = vpop.f32.mrb[1].mxu1  ;;  %v1167_v44 = vadd.f32 %v3753_v58, %v1166_v24 }
 0x513   : > { %v1169_v26 = vpop.f32.mrb[2].mxu1 }
 0x514   : > { %v2972_v27 = vpop.f32.mrb[3].mxu1  ;;  %v1170_v43 = vadd.f32 %v3753_v58, %v1169_v26  ;;  %v3790_v46 = vpack.c.bf16 %v1167_v44, %v1167_v44 }
 0x516   : > { %v3788_v45 = vpack.c.bf16 %v1170_v43, %v1170_v43 }
 0x519   : > { %v2979_v31 = vpop.f32.mrb[4].mxu1 }
 0x51a   : > { %v1224_v32 = vpop.f32.mrb[5].mxu1  ;;  %v1233_v33 = vadd.f32 %v2979_v31, %v1182_v28 }
 0x51b   : > { %v2980_v29 = vpop.f32.mrb[6].mxu1  ;;  %v1225_v36 = vadd.f32 %v1224_v32, %v1182_v28 }
 0x51c   : > { %v1236_v34 = vadd.f32 %v2980_v29, %v1182_v28  ;;  %v1227_v35 = vpop.f32.mrb[7].mxu1 }
 0x51d   : > { %v1228_v30 = vadd.f32 %v1227_v35, %v1182_v28 }
 0x51e   : > { %v3776_v37 = vpack.c.bf16 %v1236_v34, %v1233_v33 }
 0x51f   : > { %v3778_v39 = vpack.c.bf16 %v1228_v30, %v1225_v36 }
 0x520   : > { %v1294_v40 = vsel %vm1243_vm4, %v3776_v37, 0 }
 0x521   : > { %2988 = vmatpush3.bf16.xpose.msra.mxu1 %v1294_v40  ;;  %v1248_v42 = vsel %vm1243_vm4, %v3778_v39, 0 }
 0x522   : > { %2982 = vmatpush3.bf16.xpose.msra.mxu0 %v1248_v42  ;;  %2999 = vmatprep.subr.bf16.mxu1 %v3379_v56 }
 0x523   : > { %2993 = vmatprep.subr.bf16.mxu0 %v3379_v56 }
 0x528   : > { %2990 = vmatmul.mubr.msk.bf16.vlgmr.msra.gmra.mrb[8].mxu1 %vm1243_vm4, %v3788_v45 }
 0x529   : > { %2984 = vmatmul.mubr.msk.bf16.vlgmr.msra.gmra.mrb[0].mxu0 %vm1243_vm4, %v3790_v46  ;;  %3001 = vmatprep.mubr.msk.bf16.mxu1 %vm3380_vm3, %v3379_v56 }
 0x52a   : > { %2995 = vmatprep.mubr.msk.bf16.mxu0 %vm3380_vm3, %v3379_v56 }
 0x5fb   : > { %v1330_v47 = vpop.f32.mrb[8].mxu1 }
 0x5fc   : > { %v1337_v48 = vmul.f32 0.35355338, %v1330_v47  ;;  %v1284_v49 = vpop.f32.mrb[0].mxu0  ;;  %v2991_v50 = vpop.f32.mrb[9].mxu1 }
 0x5fd   : > { %v1336_v51 = vmul.f32 0.35355338, %v1284_v49  ;;  %v2985_v52 = vpop.f32.mrb[1].mxu0  ;;  %v1333_v53 = vpop.f32.mrb[10].mxu1 }
 0x5fe   : > { %v1287_v54 = vpop.f32.mrb[2].mxu0  ;;  %v2992_v55 = vpop.f32.mrb[11].mxu1  ;;  %v1342_v57 = vsel %vm1338_vm5, %v1337_v48, -inf }
 0x5ff   : > { %1343 = vmax.xlane.f32.xlu0 %v1342_v57  ;;  %v2986_v58 = vpop.f32.mrb[3].mxu0  ;;  %v1339_v59 = vsel %vm1338_vm5, %v1336_v51, -inf }
 0x600   : > { %1340 = vmax.xlane.f32.xlu1 %v1339_v59 }
 0x611   : > { %1364 = vrot.lane.b32.xlu1 %v3778_v39, %s3378_s13 }
 0x615   : > { %1462 = vrot.lane.b32.xlu1 %v3778_v39, %s3381_s19 }
 0x619   : > { %1513 = vrot.lane.b32.xlu1 %v3776_v37, %s3381_s19 }
 0x61d   : > { %1460 = vrot.lane.b32.xlu1 %v3790_v46, %s3381_s19 }
 0x68c   : > { %v1344_v60 = vpop.xlane.xlu0 %1343 }
 0x68d   : > { %v1346_v61 = vsub.f32 %v1337_v48, %v1344_v60  ;;  %v1341_v62 = vpop.xlane.xlu1 %1340 }
 0x68e   : > { %v1345_v63 = vsub.f32 %v1336_v51, %v1341_v62 }
 0x68f   : > { %v1349_v0 = vmul.f32 1.442695, %v1346_v61 }
 0x690   : > { %v1347_v1 = vmul.f32 1.442695, %v1345_v63 }
 0x691   : > { %3237 = vpow2.f32 %v1349_v0  ;;  %v1365_v5 = vpop.permute.xlu1 %1364 }
 0x692   : > { %2994 = vmatpush3.bf16.msra.mxu0 %v1365_v5  ;;  %3239 = vpow2.f32 %v1347_v1 }
 0x693   : > { %3005 = vmatprep.subr.bf16.mxu0 %v3379_v56 }
 0x695   : > { %v1463_v13 = vpop.permute.xlu1 %1462 }
 0x696   : > { %v1468_v23 = vsel %vm1243_vm4, %v1463_v13, 0 }
 0x699   : > { %v1514_v17 = vpop.permute.xlu1 %1513 }
 0x69a   : > { %v1519_v21 = vsel %vm1243_vm4, %v1514_v17, 0 }
 0x69b   : > { %v3238_v6 = vpop.eup %3237 }
 0x69c   : > { %v1354_v7 = vsel %vm1338_vm5, %v3238_v6, 0.0  ;;  %v3240_v9 = vpop.eup %3239 }
 0x69d   : > { %1355 = vadd.xlane.f32.xlu0 %v1354_v7  ;;  %v1351_v10 = vsel %vm1338_vm5, %v3240_v9, 0.0  ;;  %v1461_v25 = vpop.permute.xlu1 %1460 }
 0x6a1   : > { %1352 = vadd.xlane.f32.xlu0 %v1351_v10 }
 0x6b7   : > { %1411 = vrot.lane.b32.xlu0 %v3776_v37, %s3378_s13 }
 0x6bb   : > { %1511 = vrot.lane.b32.xlu0 %v3788_v45, %s3381_s19 }
 0x72a   : > { %v1356_v11 = vpop.xlane.xlu0 %1355 }
 0x72b   : > { %3241 = vrcp.f32 %v1356_v11 }
 0x72e   : > { %v1353_v12 = vpop.xlane.xlu0 %1352 }
 0x72f   : > { %3243 = vrcp.f32 %v1353_v12 }
 0x732   : > { %v1412_v14 = vpop.permute.xlu0 %1411 }
 0x733   : > { %3000 = vmatpush3.bf16.msra.mxu1 %v1412_v14 }
 0x734   : > { %3011 = vmatprep.subr.bf16.mxu1 %v3379_v56 }
 0x735   : > { %v3242_v15 = vpop.eup %3241 }
 0x736   : > { %v3814_v16 = vmul.f32 %v3242_v15, %v3238_v6  ;;  %v1512_v24 = vpop.permute.xlu0 %1511 }
 0x738   : > { %v1362_v18 = vpack.c.bf16 %v3814_v16, %v3814_v16 }
 0x739   : > { %v3244_v19 = vpop.eup %3243 }
 0x73a   : > { %v3818_v20 = vmul.f32 %v3244_v19, %v3240_v9  ;;  %3002 = vmatmul.mubr.msk.bf16.vlgmr.msra.gmra.mrb[12].mxu1 %vm1338_vm5, %v1362_v18 }
 0x73b   : > { %3013 = vmatprep.mubr.msk.bf16.mxu1 %vm3380_vm3, %v3379_v56 }
 0x73c   : > { %3012 = vmatpush3.bf16.xpose.msra.mxu1 %v1519_v21  ;;  %v1361_v22 = vpack.c.bf16 %v3818_v20, %v3818_v20 }
 0x73d   : > { %3023 = vmatprep.subr.bf16.mxu1 %v3379_v56 }
 0x73e   : > { %2996 = vmatmul.mubr.msk.bf16.vlgmr.msra.gmra.mrb[4].mxu0 %vm1338_vm5, %v1361_v22 }
 0x73f   : > { %3006 = vmatpush3.bf16.xpose.msra.mxu0 %v1468_v23  ;;  %3007 = vmatprep.mubr.msk.bf16.mxu0 %vm3380_vm3, %v3379_v56 }
 0x740   : > { %3017 = vmatprep.subr.bf16.mxu0 %v3379_v56 }
 0x743   : > { %3014 = vmatmul.mubr.msk.bf16.vlgmr.msra.gmra.mrb[16].mxu1 %vm1243_vm4, %v1512_v24 }
 0x744   : > { %3025 = vmatprep.mubr.msk.bf16.mxu1 %vm3380_vm3, %v3379_v56 }
 0x746   : > { %3008 = vmatmul.mubr.msk.bf16.vlgmr.msra.gmra.mrb[8].mxu0 %vm1243_vm4, %v1461_v25 }
 0x747   : > { %3019 = vmatprep.mubr.msk.bf16.mxu0 %vm3380_vm3, %v3379_v56 }
 0x80d   : > { %v3838_v26 = vpop.f32.mrb[12].mxu1 }
 0x80e   : > { %v3003_v27 = vpop.f32.mrb[13].mxu1 }
 0x80f   : > { %v1454_v28 = vpop.f32.mrb[14].mxu1 }
 0x810   : > { %v3004_v31 = vpop.f32.mrb[15].mxu1 }
 0x811   : > { %v3840_v32 = vpop.f32.mrb[4].mxu0 }
 0x812   : > { %v2997_v29 = vpop.f32.mrb[5].mxu0 }
 0x813   : > { %v1407_v33 = vpop.f32.mrb[6].mxu0 }
 0x814   : > { %v2998_v34 = vpop.f32.mrb[7].mxu0 }
 0x816   : > { %v1555_v35 = vpop.f32.mrb[16].mxu1 }
 0x817   : > { %v1562_v36 = vmul.f32 0.35355338, %v1555_v35  ;;  %v3015_v30 = vpop.f32.mrb[17].mxu1 }
 0x818   : > { %v1558_v40 = vpop.f32.mrb[18].mxu1 }
 0x819   : > { %v1504_v42 = vpop.f32.mrb[8].mxu0  ;;  %v3016_v43 = vpop.f32.mrb[19].mxu1  ;;  %v1566_v44 = vsel %vm1338_vm5, %v1562_v36, -inf }
 0x81a   : > { %v1561_v47 = vmul.f32 0.35355338, %v1504_v42  ;;  %1567 = vmax.xlane.f32.xlu0 %v1566_v44  ;;  %v3009_v48 = vpop.f32.mrb[9].mxu0 }
 0x81b   : > { %v1507_v49 = vpop.f32.mrb[10].mxu0 }
 0x81c   : > { %v3010_v50 = vpop.f32.mrb[11].mxu0  ;;  %v1563_v51 = vsel %vm1338_vm5, %v1561_v47, -inf }
 0x81d   : > { %1564 = vmax.xlane.f32.xlu1 %v1563_v51 }
 0x82e   : > { %1587 = vrot.lane.b32.xlu1 %v3778_v39, %s3382_s2 }
 0x832   : > { %1685 = vrot.lane.b32.xlu1 %v3778_v39, %s3383_s15 }
 0x836   : > { %1735 = vrot.lane.b32.xlu1 %v3776_v37, %s3383_s15 }
 0x83a   : > { %1683 = vrot.lane.b32.xlu1 %v3790_v46, %s3383_s15 }
 0x8a7   : > { %v1568_v52 = vpop.xlane.xlu0 %1567 }
 0x8a8   : > { %v1570_v53 = vsub.f32 %v1562_v36, %v1568_v52 }
 0x8aa   : > { %v1573_v54 = vmul.f32 1.442695, %v1570_v53  ;;  %v1565_v55 = vpop.xlane.xlu1 %1564 }
 0x8ab   : > { %v1569_v57 = vsub.f32 %v1561_v47, %v1565_v55 }
 0x8ac   : > { %3245 = vpow2.f32 %v1573_v54 }
 0x8ad   : > { %v1571_v58 = vmul.f32 1.442695, %v1569_v57 }
 0x8ae   : > { %v1588_v59 = vpop.permute.xlu1 %1587 }
 0x8af   : > { %3247 = vpow2.f32 %v1571_v58  ;;  %3018 = vmatpush3.bf16.msra.mxu0 %v1588_v59 }
 0x8b0   : > { %3029 = vmatprep.subr.bf16.mxu0 %v3379_v56 }
 0x8b2   : > { %v1686_v5 = vpop.permute.xlu1 %1685 }
 0x8b3   : > { %v1691_v17 = vsel %vm1243_vm4, %v1686_v5, 0 }
 0x8b6   : > { %v3246_v60 = vpop.eup %3245  ;;  %v1736_v10 = vpop.permute.xlu1 %1735 }
 0x8b7   : > { %v1578_v61 = vsel %vm1338_vm5, %v3246_v60, 0.0  ;;  %v1741_v14 = vsel %vm1243_vm4, %v1736_v10, 0 }
 0x8b8   : > { %1579 = vadd.xlane.f32.xlu0 %v1578_v61 }
 0x8b9   : > { %v3248_v62 = vpop.eup %3247 }
 0x8ba   : > { %v1575_v63 = vsel %vm1338_vm5, %v3248_v62, 0.0  ;;  %v1684_v19 = vpop.permute.xlu1 %1683 }
 0x8bc   : > { %1576 = vadd.xlane.f32.xlu0 %v1575_v63 }
 0x8d2   : > { %1633 = vrot.lane.b32.xlu0 %v3776_v37, %s3382_s2 }
 0x8d6   : > { %1733 = vrot.lane.b32.xlu0 %v3788_v45, %s3383_s15 }
 0x945   : > { %v1580_v0 = vpop.xlane.xlu0 %1579 }
 0x946   : > { %3249 = vrcp.f32 %v1580_v0 }
 0x949   : > { %v1577_v1 = vpop.xlane.xlu0 %1576 }
 0x94a   : > { %3251 = vrcp.f32 %v1577_v1 }
 0x94d   : > { %v1634_v6 = vpop.permute.xlu0 %1633 }
 0x94e   : > { %3024 = vmatpush3.bf16.msra.mxu1 %v1634_v6 }
 0x94f   : > { %3035 = vmatprep.subr.bf16.mxu1 %v3379_v56 }
 0x950   : > { %v3250_v7 = vpop.eup %3249 }
 0x951   : > { %v3854_v9 = vmul.f32 %v3250_v7, %v3246_v60  ;;  %v1734_v18 = vpop.permute.xlu0 %1733 }
 0x953   : > { %v1586_v11 = vpack.c.bf16 %v3854_v9, %v3854_v9  ;;  %v1682_v1 = vadd.f32 %v3854_v9, %v3814_v16 }
 0x954   : > { %v3252_v12 = vpop.eup %3251 }
 0x955   : > { %v3858_v13 = vmul.f32 %v3252_v12, %v3248_v62  ;;  %3026 = vmatmul.mubr.msk.bf16.vlgmr.msra.gmra.mrb[20].mxu1 %vm1338_vm5, %v1586_v11 }
 0x956   : > { %3037 = vmatprep.mubr.msk.bf16.mxu1 %vm3380_vm3, %v3379_v56 }
 0x957   : > { %3036 = vmatpush3.bf16.xpose.msra.mxu1 %v1741_v14  ;;  %v1585_v15 = vpack.c.bf16 %v3858_v13, %v3858_v13 }
 0x958   : > { %3047 = vmatprep.subr.bf16.mxu1 %v3379_v56 }
 0x959   : > { %3020 = vmatmul.mubr.msk.bf16.vlgmr.msra.gmra.mrb[12].mxu0 %vm1338_vm5, %v1585_v15 }
 0x95a   : > { %3030 = vmatpush3.bf16.xpose.msra.mxu0 %v1691_v17  ;;  %3031 = vmatprep.mubr.msk.bf16.mxu0 %vm3380_vm3, %v3379_v56 }
 0x95b   : > { %3041 = vmatprep.subr.bf16.mxu0 %v3379_v56 }
 0x95e   : > { %3038 = vmatmul.mubr.msk.bf16.vlgmr.msra.gmra.mrb[24].mxu1 %vm1243_vm4, %v1734_v18 }
 0x95f   : > { %3049 = vmatprep.mubr.msk.bf16.mxu1 %vm3380_vm3, %v3379_v56 }
 0x961   : > { %3032 = vmatmul.mubr.msk.bf16.vlgmr.msra.gmra.mrb[16].mxu0 %vm1243_vm4, %v1684_v19 }
 0x962   : > { %3043 = vmatprep.mubr.msk.bf16.mxu0 %vm3380_vm3, %v3379_v56 }
 0xa28   : > { %v3878_v21 = vpop.f32.mrb[20].mxu1 }
 0xa29   : > { %v3027_v22 = vpop.f32.mrb[21].mxu1 }
 0xa2a   : > { %v1676_v23 = vpop.f32.mrb[22].mxu1 }
 0xa2b   : > { %v3028_v24 = vpop.f32.mrb[23].mxu1 }
 0xa2c   : > { %v3880_v25 = vpop.f32.mrb[12].mxu0 }
 0xa2d   : > { %v3021_v27 = vpop.f32.mrb[13].mxu0 }
 0xa2e   : > { %v1630_v28 = vpop.f32.mrb[14].mxu0 }
 0xa2f   : > { %v3022_v31 = vpop.f32.mrb[15].mxu0 }
 0xa31   : > { %v1777_v29 = vpop.f32.mrb[24].mxu1 }
 0xa32   : > { %v1784_v33 = vmul.f32 0.35355338, %v1777_v29  ;;  %v3039_v34 = vpop.f32.mrb[25].mxu1 }
 0xa33   : > { %v1780_v35 = vpop.f32.mrb[26].mxu1 }
 0xa34   : > { %v1727_v36 = vpop.f32.mrb[16].mxu0  ;;  %v3040_v30 = vpop.f32.mrb[27].mxu1  ;;  %v1788_v40 = vsel %vm1338_vm5, %v1784_v33, -inf }
 0xa35   : > { %v1783_v42 = vmul.f32 0.35355338, %v1727_v36  ;;  %1789 = vmax.xlane.f32.xlu0 %v1788_v40  ;;  %v3033_v43 = vpop.f32.mrb[17].mxu0 }
 0xa36   : > { %v1730_v44 = vpop.f32.mrb[18].mxu0 }
 0xa37   : > { %v3034_v47 = vpop.f32.mrb[19].mxu0  ;;  %v1785_v48 = vsel %vm1338_vm5, %v1783_v42, -inf }
 0xa38   : > { %1786 = vmax.xlane.f32.xlu1 %v1785_v48  ;;  %v1679_v48 = vpack.c.bf16 %v3880_v25, %v3880_v25 }
 0xa49   : > { %1809 = vrot.lane.b32.xlu1 %v3778_v39, %s3384_s18 }
 0xa4d   : > { %1907 = vrot.lane.b32.xlu1 %v3778_v39, %s3385_s1 }
 0xa51   : > { %1957 = vrot.lane.b32.xlu1 %v3776_v37, %s3385_s1 }
 0xa55   : > { %1905 = vrot.lane.b32.xlu1 %v3790_v46, %s3385_s1 }
 0xac2   : > { %v1790_v49 = vpop.xlane.xlu0 %1789 }
 0xac3   : > { %v1792_v50 = vsub.f32 %v1784_v33, %v1790_v49  ;;  %v1680_v49 = vpack.c.bf16 %v3878_v21, %v3878_v21 }
 0xac5   : > { %v1795_v51 = vmul.f32 1.442695, %v1792_v50  ;;  %v1787_v52 = vpop.xlane.xlu1 %1786 }
 0xac6   : > { %v1791_v53 = vsub.f32 %v1783_v42, %v1787_v52 }
 0xac7   : > { %3253 = vpow2.f32 %v1795_v51 }
 0xac8   : > { %v1793_v54 = vmul.f32 1.442695, %v1791_v53 }
 0xac9   : > { %v1810_v55 = vpop.permute.xlu1 %1809 }
 0xaca   : > { %3255 = vpow2.f32 %v1793_v54  ;;  %3042 = vmatpush3.bf16.msra.mxu0 %v1810_v55 }
 0xacb   : > { %3053 = vmatprep.subr.bf16.mxu0 %v3379_v56 }
 0xacd   : > { %v1908_v62 = vpop.permute.xlu1 %1907 }
 0xace   : > { %v1913_v9 = vsel %vm1243_vm4, %v1908_v62, 0 }
 0xad1   : > { %v3254_v57 = vpop.eup %3253  ;;  %v1958_v6 = vpop.permute.xlu1 %1957 }
 0xad2   : > { %v1800_v58 = vsel %vm1338_vm5, %v3254_v57, 0.0  ;;  %v1963_v14 = vsel %vm1243_vm4, %v1958_v6, 0 }
 0xad3   : > { %1801 = vadd.xlane.f32.xlu0 %v1800_v58 }
 0xad4   : > { %v3256_v59 = vpop.eup %3255 }
 0xad5   : > { %v1797_v60 = vsel %vm1338_vm5, %v3256_v59, 0.0 }
 0xad7   : > { %1798 = vadd.xlane.f32.xlu0 %v1797_v60 }
 0xaed   : > { %1855 = vrot.lane.b32.xlu0 %v3776_v37, %s3384_s18 }
 0xaf1   : > { %1955 = vrot.lane.b32.xlu0 %v3788_v45, %s3385_s1  ;;  %v1681_v45 = vadd.f32 %v3858_v13, %v3818_v20  ;;  %v1906_v13 = vpop.permute.xlu1 %1905 }
 0xb60   : > { %v1802_v46 = vpop.xlane.xlu0 %1801 }
 0xb61   : > { %3257 = vrcp.f32 %v1802_v46 }
 0xb64   : > { %v1799_v61 = vpop.xlane.xlu0 %1798 }
 0xb65   : > { %3259 = vrcp.f32 %v1799_v61 }
 0xb68   : > { %v1856_v63 = vpop.permute.xlu0 %1855 }
 0xb69   : > { %3048 = vmatpush3.bf16.msra.mxu1 %v1856_v63 }
 0xb6a   : > { %3059 = vmatprep.subr.bf16.mxu1 %v3379_v56 }
 0xb6b   : > { %v3258_v0 = vpop.eup %3257 }
 0xb6c   : > { %v1806_v5 = vmul.f32 %v3258_v0, %v3254_v57  ;;  %v1956_v20 = vpop.permute.xlu0 %1955 }
 0xb6e   : > { %v3896_v7 = vadd.f32 %v1806_v5, %v1682_v1  ;;  %v1808_v10 = vpack.c.bf16 %v1806_v5, %v1806_v5 }
 0xb6f   : > { %v3260_v11 = vpop.eup %3259 }
 0xb70   : > { %v1804_v12 = vmul.f32 %v3260_v11, %v3256_v59  ;;  %3050 = vmatmul.mubr.msk.bf16.vlgmr.msra.gmra.mrb[28].mxu1 %vm1338_vm5, %v1808_v10 }
 0xb71   : > { %3061 = vmatprep.mubr.msk.bf16.mxu1 %vm3380_vm3, %v3379_v56 }
 0xb72   : > { %v3904_v15 = vadd.f32 %v1804_v12, %v1681_v45  ;;  %3060 = vmatpush3.bf16.xpose.msra.mxu1 %v1963_v14  ;;  %v1807_v16 = vpack.c.bf16 %v1804_v12, %v1804_v12  ;;  %v3225_v45 = vld [vmem:[%s3620_s24] sm:$0xff]  }
 0xb73   : > { %3071 = vmatprep.subr.bf16.mxu1 %v3379_v56 }
 0xb74   : > { %3044 = vmatmul.mubr.msk.bf16.vlgmr.msra.gmra.mrb[20].mxu0 %vm1338_vm5, %v1807_v16 }
 0xb75   : > { %3054 = vmatpush3.bf16.xpose.msra.mxu0 %v1913_v9  ;;  %3055 = vmatprep.mubr.msk.bf16.mxu0 %vm3380_vm3, %v3379_v56 }
 0xb76   : > { %3065 = vmatprep.subr.bf16.mxu0 %v3379_v56 }
 0xb79   : > { %3062 = vmatmul.mubr.msk.bf16.vlgmr.msra.gmra.mrb[32].mxu1 %vm1243_vm4, %v1956_v20 }
 0xb7a   : > { %3073 = vmatprep.mubr.msk.bf16.mxu1 %vm3380_vm3, %v3379_v56 }
 0xb7c   : > { %3056 = vmatmul.mubr.msk.bf16.vlgmr.msra.gmra.mrb[24].mxu0 %vm1243_vm4, %v1906_v13 }
 0xb7d   : > { %3067 = vmatprep.mubr.msk.bf16.mxu0 %vm3380_vm3, %v3379_v56 }
 0xc43   : > { %v1895_v17 = vpop.f32.mrb[28].mxu1 }
 0xc44   : > { %v3051_v18 = vpop.f32.mrb[29].mxu1  ;;  %v1902_v60 = vpack.c.bf16 %v1895_v17, %v1895_v17 }
 0xc45   : > { %v1898_v19 = vpop.f32.mrb[30].mxu1 }
 0xc46   : > { %v3052_v22 = vpop.f32.mrb[31].mxu1 }
 0xc47   : > { %v1849_v23 = vpop.f32.mrb[20].mxu0 }
 0xc48   : > { %v3045_v24 = vpop.f32.mrb[21].mxu0  ;;  %v1901_v50 = vpack.c.bf16 %v1849_v23, %v1849_v23 }
 0xc49   : > { %v1852_v27 = vpop.f32.mrb[22].mxu0 }
 0xc4a   : > { %v3046_v28 = vpop.f32.mrb[23].mxu0 }
 0xc4b   : > { %v1458_v28 = vpack.c.bf16 %v3838_v26, %v3838_v26  ;;  %v2162_v26 = vsub.s32 4, %v3757_v2 }
 0xc4c   : > { %v1999_v31 = vpop.f32.mrb[32].mxu1 }
 0xc4d   : > { %v2006_v29 = vmul.f32 0.35355338, %v1999_v31  ;;  %v3063_v33 = vpop.f32.mrb[33].mxu1  ;;  %v1457_v31 = vpack.c.bf16 %v3840_v32, %v3840_v32  ;;  %v2163_v32 = vrot.slane %v3761_v4, %v2162_v26 }
 0xc4e   : > { %v2002_v34 = vpop.f32.mrb[34].mxu1 }
 0xc4f   : > { %v1949_v35 = vpop.f32.mrb[24].mxu0  ;;  %v3064_v36 = vpop.f32.mrb[35].mxu1  ;;  %v2010_v30 = vsel %vm1338_vm5, %v2006_v29, -inf }
 0xc50   : > { %v2005_v40 = vmul.f32 0.35355338, %v1949_v35  ;;  %2011 = vmax.xlane.f32.xlu0 %v2010_v30  ;;  %v3057_v42 = vpop.f32.mrb[25].mxu0 }
 0xc51   : > { %v1952_v43 = vpop.f32.mrb[26].mxu0 }
 0xc52   : > { %v3058_v44 = vpop.f32.mrb[27].mxu0  ;;  %v2007_v47 = vsel %vm1338_vm5, %v2005_v40, -inf }
 0xc53   : > { %2008 = vmax.xlane.f32.xlu1 %v2007_v47 }
 0xc64   : > { %2031 = vrot.lane.b32.xlu1 %v3778_v39, %s3386_s26 }
 0xc68   : > { %2129 = vrot.lane.b32.xlu1 %v1679_v48, %s3387_s30 }
 0xc6c   : > { %2131 = vrot.lane.b32.xlu1 %v1680_v49, %s3387_s30 }
 0xc70   : > { %2135 = vrot.lane.b32.xlu1 %v1901_v50, %s3388_s22 }
 0xcdd   : > { %v2012_v51 = vpop.xlane.xlu0 %2011 }
 0xcde   : > { %v2014_v52 = vsub.f32 %v2006_v29, %v2012_v51 }
 0xce0   : > { %v2017_v53 = vmul.f32 1.442695, %v2014_v52  ;;  %v2009_v54 = vpop.xlane.xlu1 %2008 }
 0xce1   : > { %v2013_v55 = vsub.f32 %v2005_v40, %v2009_v54 }
 0xce2   : > { %3261 = vpow2.f32 %v2017_v53 }
 0xce3   : > { %v2015_v57 = vmul.f32 1.442695, %v2013_v55 }
 0xce4   : > { %v2032_v39 = vpop.permute.xlu1 %2031 }
 0xce5   : > { %3263 = vpow2.f32 %v2015_v57  ;;  %3066 = vmatpush3.bf16.msra.mxu0 %v2032_v39 }
 0xce6   : > { %3077 = vmatprep.subr.bf16.mxu0 %v3379_v56 }
 0xce8   : > { %v2130_v22 = vpop.permute.xlu1 %2129 }
 0xce9   : > { %v2147_v33 = vsel %vm1243_vm4, %v1457_v31, %v2130_v22  ;;  %v2893_v31 = vld [vmem:[%s4117_s0] ss:$0 sm:$0xff] }
 0xcec   : > { %v3262_v25 = vpop.eup %3261  ;;  %v2132_v23 = vpop.permute.xlu1 %2131 }
 0xced   : > { %v2022_v58 = vsel %vm1338_vm5, %v3262_v25, 0.0  ;;  %v2150_v34 = vsel %vm1243_vm4, %v1458_v28, %v2132_v23  ;;  %v3232_v28 = vld [vmem:[%s3645_s3 + $0x18] sm:$0xff]  }
 0xcee   : > { %2023 = vadd.xlane.f32.xlu0 %v2022_v58 }
 0xcef   : > { %v3264_v21 = vpop.eup %3263 }
 0xcf0   : > { %v2019_v59 = vsel %vm1338_vm5, %v3264_v21, 0.0  ;;  %v2136_v27 = vpop.permute.xlu1 %2135 }
 0xcf1   : > { %v2152_v35 = vsel %vm1338_vm5, %v2147_v33, %v2136_v27  ;;  %v3231_v27 = vld [vmem:[%s3645_s3 + $0x10] sm:$0xff]  }
 0xcf2   : > { %2020 = vadd.xlane.f32.xlu0 %v2019_v59 }
 0xd08   : > { %2077 = vrot.lane.b32.xlu0 %v3776_v37, %s3386_s26 }
 0xd0c   : > { %2137 = vrot.lane.b32.xlu0 %v1902_v60, %s3388_s22 }
 0xd7b   : > { %v2024_v46 = vpop.xlane.xlu0 %2023 }
 0xd7c   : > { %3265 = vrcp.f32 %v2024_v46 }
 0xd7f   : > { %v2021_v61 = vpop.xlane.xlu0 %2020 }
 0xd80   : > { %3267 = vrcp.f32 %v2021_v61  ;;  %v3227_v61 = vld [vmem:[%s3625_s29] sm:$0xff]  }
 0xd83   : > { %v2078_v62 = vpop.permute.xlu0 %2077 }
 0xd84   : > { %3072 = vmatpush3.bf16.msra.mxu1 %v2078_v62  ;;  %v3228_v62 = vld [vmem:[%s3625_s29 + $0x8] sm:$0xff]  }
 0xd85   : > { %3085 = vmatprep.subr.bf16.mxu1 %v3379_v56 }
 0xd86   : > { %v3266_v63 = vpop.eup %3265 }
 0xd87   : > { %v2028_v0 = vmul.f32 %v3266_v63, %v3262_v25  ;;  %v2138_v24 = vpop.permute.xlu0 %2137  ;;  %v3229_v63 = vld [vmem:[%s3645_s3] sm:$0xff]  }
 0xd88   : > { %v2154_v36 = vsel %vm1338_vm5, %v2150_v34, %v2138_v24 }
 0xd89   : > { %v3931_v1 = vadd.f32 %v2028_v0, %v3896_v7  ;;  %v2030_v5 = vpack.c.bf16 %v2028_v0, %v2028_v0  ;;  %v3226_v7 = vld [vmem:[%s3620_s24 + $0x8] sm:$0xff]  }
 0xd8a   : > { %v3268_v6 = vpop.eup %3267  ;;  %v3230_v0 = vld [vmem:[%s3645_s3 + $0x8] sm:$0xff]   ;;  %s4119_s3 = sld [smem:[#allocation17_spill]] (!%p2902_p13) }
 0xd8b   : > { %v2026_v37 = vmul.f32 %v3268_v6, %v3264_v21  ;;  %3074 = vmatmul.mubr.msk.bf16.vlgmr.msra.gmra.mrb[36].mxu1 %vm1338_vm5, %v2030_v5 }
 0xd8c   : > { %3089 = vmatprep.mubr.msk.bf16.mxu1 %vm3380_vm3, %v3379_v56  ;;  %3086 = vmatpush3.bf16.msra.mxu1 %v3227_v61  ;;  %v3274_v61 = vld [vmem:[%s3635_s23 + $0x8] sm:$0xff] (!%p2902_p13)  }
 0xd8d   : > { %v3937_v10 = vadd.f32 %v2026_v37, %v3904_v15  ;;  %v2029_v11 = vpack.c.bf16 %v2026_v37, %v2026_v37  ;;  %3087 = vmatprep.subr.bf16.mxu1 %v3379_v56 }
 0xd8f   : > { %3068 = vmatmul.mubr.msk.bf16.vlgmr.msra.gmra.mrb[28].mxu0 %vm1338_vm5, %v2029_v11 }
 0xd90   : > { %3081 = vmatprep.mubr.msk.bf16.mxu0 %vm3380_vm3, %v3379_v56  ;;  %3078 = vmatpush3.bf16.msra.mxu0 %v3225_v45  ;;  %s4120_s4 = scalar_lea.vmem (!%p2902_p13), [#allocation4], %s4119_s3 }
 0xd91   : > { %3079 = vmatprep.subr.bf16.mxu0 %v3379_v56  ;;  %3088 = vmatpush3.bf16.msra.mxu1 %v3228_v62 }
 0xd94   : > { %3080 = vmatpush3.bf16.msra.mxu0 %v3226_v7 }
 0xd95   : > { %3093 = vmatprep.subr.bf16.mxu0 %v3379_v56 }
 0xe5e   : > { %v2117_v12 = vpop.f32.mrb[36].mxu1 }
 0xe5f   : > { %v2124_v14 = vpack.c.bf16 %v2117_v12, %v2117_v12  ;;  %v3075_v16 = vpop.f32.mrb[37].mxu1  ;;  %v2255_v12 = vsub.s32 2, %v3757_v2 }
 0xe60   : > { %v2120_v9 = vpop.f32.mrb[38].mxu1 }
 0xe61   : > { %2143 = vrot.lane.b32.xlu0 %v2124_v14, %s3389_s17  ;;  %v3076_v15 = vpop.f32.mrb[39].mxu1  ;;  %v2256_v16 = vrot.slane %v3761_v4, %v2255_v12 }
 0xe62   : > { %v2071_v20 = vpop.f32.mrb[28].mxu0  ;;  %v2261_v15 = vsub.s32 3, %v3757_v2 }
 0xe63   : > { %v2123_v13 = vpack.c.bf16 %v2071_v20, %v2071_v20  ;;  %v3069_v17 = vpop.f32.mrb[29].mxu0 }
 0xe64   : > { %v2074_v18 = vpop.f32.mrb[30].mxu0 }
 0xe65   : > { %2141 = vrot.lane.b32.xlu1 %v2123_v13, %s3389_s17  ;;  %v3070_v19 = vpop.f32.mrb[31].mxu0  ;;  %v2262_v18 = vrot.slane %v3761_v4, %v2261_v15 }
 0xed3   : > { %v2144_v29 = vpop.permute.xlu0 %2143 }
 0xed4   : > { %v2159_v40 = vsel %vm2155_vm6, %v2154_v36, %v2144_v29 }
 0xed7   : > { %v2142_v30 = vpop.permute.xlu1 %2141 }
 0xed8   : > { %v2157_v42 = vsel %vm2155_vm6, %v2152_v35, %v2142_v30 }
 0xed9   : > { %v2889_v43 = vcombine.low %v2157_v42, %v2159_v40 }
 0xedb   : > { %3082 = vmatmul.mubr.msk.bf16.vlgmr.msra.gmra.mrb[32].mxu0 %vm1070_vm2, %v2889_v43 }
 0xedc   : > { %3101 = vmatprep.mubr.msk.bf16.mxu0 %vm3380_vm3, %v3379_v56  ;;  %3094 = vmatpush3.bf16.msra.mxu0 %v3229_v63 }
 0xedd   : > { %3095 = vmatprep.subr.bf16.mxu0 %v3379_v56 }
 0xee0   : > { %3096 = vmatpush3.bf16.msra.mxu0 %v3230_v0 }
 0xee1   : > { %3097 = vmatprep.subr.bf16.mxu0 %v3379_v56 }
 0xee4   : > { %3098 = vmatpush3.bf16.msra.mxu0 %v3231_v27 }
 0xee5   : > { %3099 = vmatprep.subr.bf16.mxu0 %v3379_v56  ;;  %v2333_v56 = vsub.s32 5, %v3757_v2  ;;  %v2903_v2 = vld [vmem:[%s800_s20] ss:$0 sm:$0xff] (!%p2902_p13) }
 0xee7   : > { %v2334_v26 = vrot.slane %v3761_v4, %v2333_v56 }
 0xee8   : > { %3100 = vmatpush3.bf16.msra.mxu0 %v3232_v28 }
 0xfae   : > { %v2218_v44 = vpop.f32.mrb[32].mxu0 }
 0xfaf   : > { %v2219_v47 = vadd.f32 %v2218_v44, %v2163_v32  ;;  %v3083_v48 = vpop.f32.mrb[33].mxu0 }
 0xfb0   : > { %v2221_v49 = vpop.f32.mrb[34].mxu0 }
 0xfb1   : > { %v3960_v50 = vadd.f32 %v2219_v47, %v3725_v38  ;;  %v2222_v51 = vadd.f32 %v2221_v49, %v2163_v32  ;;  %v3084_v52 = vpop.f32.mrb[35].mxu0 }
 0xfb3   : > { %v3963_v53 = vadd.f32 %v2222_v51, %v3727_v41  ;;  %v2227_v54 = vsel %vm1070_vm2, %v3960_v50, 0.0 }
 0xfb4   : > { %2228 = vadd.xlane.f32.xlu1 %v2227_v54 }
 0xfb5   : > { %v2230_v55 = vsel %vm1070_vm2, %v3963_v53, 0.0 }
 0xfb6   : > { %2231 = vadd.xlane.f32.xlu0 %v2230_v55 }
0x1041   : > { %v2229_v57 = vpop.xlane.xlu1 %2228 }
0x1042   : > { %v2233_v39 = vmul.f32 0.03125, %v2229_v57 }
0x1043   : > { %v2232_v38 = vpop.xlane.xlu0 %2231 }
0x1044   : > { %v2235_v25 = vsub.f32 %v3960_v50, %v2233_v39  ;;  %v2234_v58 = vmul.f32 0.03125, %v2232_v38 }
0x1046   : > { %v2236_v41 = vsub.f32 %v3963_v53, %v2234_v58  ;;  %v2237_v21 = vmul.f32 %v2235_v25, %v2235_v25 }
0x1048   : > { %v2239_v59 = vsel %vm1070_vm2, %v2237_v21, 0.0  ;;  %v2238_v60 = vmul.f32 %v2236_v41, %v2236_v41 }
0x1049   : > { %2240 = vadd.xlane.f32.xlu0 %v2239_v59 }
0x104a   : > { %v2242_v46 = vsel %vm1070_vm2, %v2238_v60, 0.0  ;;  %v3273_v60 = vld [vmem:[%s3635_s23] sm:$0xff] (!%p2902_p13)  }
0x104d   : > { %2243 = vadd.xlane.f32.xlu0 %v2242_v46  ;;  %v3390_v46 = vmov (!%p2902_p13), 0.0  }
0x104e   : > { %3105 = vmatprep.subr.bf16.mxu0 (!%p2902_p13), %v3390_v46 }
0x10d6   : > { %v2241_v5 = vpop.xlane.xlu0 %2240 }
0x10d7   : > { %v2245_v6 = vmul.f32 0.03125, %v2241_v5 }
0x10d9   : > { %v2247_v37 = vadd.f32 1e-05, %v2245_v6 }
0x10da   : > { %v2244_v11 = vpop.xlane.xlu0 %2243 }
0x10db   : > { %3269 = vrsqrt.f32 %v2247_v37  ;;  %v2246_v45 = vmul.f32 0.03125, %v2244_v11  ;;  %v2412_v11 = vld [vmem:[%s4120_s4] sm:$0x3] (!%p2902_p13) }
0x10dc   : > { %v2442_v12 = vrot.slane (!%p2902_p13), %v2412_v11, %v1100_v3  ;;  %v2448_v15 = vrot.slane (!%p2902_p13), %v2412_v11, %v1106_v8 }
0x10dd   : > { %v2248_v7 = vadd.f32 1e-05, %v2246_v45 }
0x10df   : > { %3271 = vrsqrt.f32 %v2248_v7 }
0x10e5   : > { %v3270_v14 = vpop.eup %3269 }
0x10e6   : > { %v2251_v9 = vmul.f32 %v3270_v14, %v2235_v25 }
0x10e8   : > { %v2257_v13 = vmul.f32 %v2256_v16, %v2251_v9 }
0x10e9   : > { %v3272_v20 = vpop.eup %3271 }
0x10ea   : > { %v2252_v17 = vmul.f32 %v3272_v20, %v2236_v41  ;;  %v2263_v22 = vadd.f32 %v2262_v18, %v2257_v13 }
0x10ec   : > { %v2258_v19 = vmul.f32 %v2256_v16, %v2252_v17 }
0x10ee   : > { %v2264_v23 = vadd.f32 %v2262_v18, %v2258_v19  ;;  %v2522_v19 = vmul.f32 (!%p2902_p13), 0.25, %v3937_v10 }
0x10f0   : > { %v2265_v24 = vpack.c.bf16 %v2264_v23, %v2263_v22  ;;  %v2523_v22 = vmul.f32 (!%p2902_p13), 0.25, %v3931_v1  ;;  %2524 = vst.msk [vmem:[%s3650_s21] sm:$0xff] (!%p2902_p13), %vm1338_vm5, %v2522_v19 }
0x10f2   : > { %3090 = vmatmul.mubr.msk.bf16.vlgmr.msra.gmra.mrb[40].mxu1 %vm1070_vm2, %v2265_v24  ;;  %2525 = vst.msk [vmem:[%s3650_s21 + $0x8] sm:$0xff] (!%p2902_p13), %vm1338_vm5, %v2523_v22 }
0x11c5   : > { %v2321_v29 = vpop.f32.mrb[40].mxu1 }
0x11c6   : > { %v2322_v33 = vadd.f32 %v2893_v31, %v2321_v29  ;;  %v3091_v34 = vpop.f32.mrb[41].mxu1 }
0x11c7   : > { %v2324_v35 = vpop.f32.mrb[42].mxu1 }
0x11c8   : > { %v2325_v36 = vadd.f32 %v2893_v31, %v2324_v35  ;;  %v3092_v30 = vpop.f32.mrb[43].mxu1  ;;  %v2328_v40 = vmax.f32 %v2322_v33, 0.0 }
0x11ca   : > { %v2329_v42 = vmax.f32 %v2325_v36, 0.0 }
0x11cc   : > { %v2330_v43 = vpack.c.bf16 %v2329_v42, %v2328_v40 }
0x11ce   : > { %3102 = vmatmul.mubr.msk.bf16.vlgmr.msra.gmra.mrb[36].mxu0 %vm2359_vm7, %v2330_v43 }
0x11cf   : > { %3109 = vmatprep.mubr.msk.bf16.mxu0 (!%p2902_p13), %vm3391_vm8, %v3390_v46  ;;  %3106 = vmatpush3.bf16.msra.mxu0 (!%p2902_p13), %v3273_v60 }
0x11d0   : > { %3107 = vmatprep.subr.bf16.mxu0 (!%p2902_p13), %v3390_v46 }
0x11d3   : > { %3108 = vmatpush3.bf16.msra.mxu0 (!%p2902_p13), %v3274_v61 }
0x12a1   : > { %v2397_v32 = vpop.f32.mrb[36].mxu0 }
0x12a2   : > { %v2398_v44 = vadd.f32 %v2397_v32, %v2334_v26  ;;  %v3103_v47 = vpop.f32.mrb[37].mxu0  ;;  %2411 = sbr.rel (%p2902_p13) target bundleno = 5310 (0x14be), region = 88 }
0x12a3   : > { %v2400_v48 = vpop.f32.mrb[38].mxu0 }
0x12a4   : > { %v2404_v49 = vadd.f32 %v2398_v44, %v3960_v50  ;;  %v2401_v51 = vadd.f32 %v2400_v48, %v2334_v26  ;;  %v3104_v52 = vpop.f32.mrb[39].mxu0 }
0x12a6   : > { %2406 = vst.msk [vmem:[#allocation2] sm:$0xff] %vm1070_vm2, %v2404_v49  ;;  %v2405_v54 = vadd.f32 %v2401_v51, %v3963_v53  ;;  %v2413_v55 = vsel (!%p2902_p13), %vm1070_vm2, %v2404_v49, 0.0 }
0x12a7   : > { %2414 = vadd.xlane.f32.xlu0 (!%p2902_p13), %v2413_v55 }
0x12a8   : > { %2407 = vst.msk [vmem:[#allocation2 + $0x8] sm:$0xff] %vm1070_vm2, %v2405_v54  ;;  %v2416_v4 = vsel (!%p2902_p13), %vm1070_vm2, %v2405_v54, 0.0 }
0x12ab   : > { %2417 = vadd.xlane.f32.xlu0 %v2416_v4 }
0x1334   : > { %v2415_v57 = vpop.xlane.xlu0 %2414 }
0x1335   : > { %v2419_v50 = vmul.f32 0.03125, %v2415_v57 }
0x1337   : > { %v2421_v39 = vsub.f32 %v2404_v49, %v2419_v50 }
0x1338   : > { %v2418_v38 = vpop.xlane.xlu0 %2417 }
0x1339   : > { %v2420_v25 = vmul.f32 0.03125, %v2418_v38  ;;  %v2423_v58 = vmul.f32 %v2421_v39, %v2421_v39 }
0x133b   : > { %v2422_v53 = vsub.f32 %v2405_v54, %v2420_v25  ;;  %v2425_v41 = vsel %vm1070_vm2, %v2423_v58, 0.0 }
0x133c   : > { %2426 = vadd.xlane.f32.xlu1 %v2425_v41 }
0x133d   : > { %v2424_v21 = vmul.f32 %v2422_v53, %v2422_v53 }
0x133f   : > { %v2428_v59 = vsel %vm1070_vm2, %v2424_v21, 0.0 }
0x1340   : > { %2429 = vadd.xlane.f32.xlu1 %v2428_v59 }
0x13c9   : > { %v2427_v62 = vpop.xlane.xlu1 %2426 }
0x13ca   : > { %v2431_v63 = vmul.f32 0.03125, %v2427_v62 }
0x13cc   : > { %v2433_v0 = vadd.f32 1e-05, %v2431_v63 }
0x13cd   : > { %v2430_v5 = vpop.xlane.xlu1 %2429 }
0x13ce   : > { %3275 = vrsqrt.f32 %v2433_v0  ;;  %v2432_v6 = vmul.f32 0.03125, %v2430_v5 }
0x13d0   : > { %v2434_v37 = vadd.f32 1e-05, %v2432_v6 }
0x13d2   : > { %3277 = vrsqrt.f32 %v2434_v37 }
0x13d8   : > { %v3276_v45 = vpop.eup %3275 }
0x13d9   : > { %v2437_v7 = vmul.f32 %v3276_v45, %v2421_v39 }
0x13db   : > { %v2443_v9 = vmul.f32 %v2442_v12, %v2437_v7 }
0x13dc   : > { %v3278_v14 = vpop.eup %3277 }
0x13dd   : > { %v2438_v16 = vmul.f32 %v3278_v14, %v2422_v53  ;;  %v2449_v13 = vadd.f32 %v2448_v15, %v2443_v9 }
0x13df   : > { %v2444_v20 = vmul.f32 %v2442_v12, %v2438_v16 }
0x13e1   : > { %v2450_v17 = vadd.f32 %v2448_v15, %v2444_v20 }
0x13e3   : > { %v2451_v18 = vpack.c.bf16 %v2450_v17, %v2449_v13 }
0x13e5   : > { %3110 = vmatmul.mubr.msk.bf16.vlgmr.msra.gmra.mrb[0].mxu0 %vm1070_vm2, %v2451_v18 }
0x14b8   : > { %v2512_v3 = vpop.f32.mrb[0].mxu0 }
0x14b9   : > { %v2513_v8 = vadd.f32 %v2903_v2, %v2512_v3  ;;  %v3111_v23 = vpop.f32.mrb[1].mxu0 }
0x14ba   : > { %v2515_v24 = vpop.f32.mrb[2].mxu0 }
0x14bb   : > { %2520 = vst.msk [vmem:[%s3640_s6] sm:$0xff] %vm2519_vm9, %v2513_v8  ;;  %v2516_v27 = vadd.f32 %v2903_v2, %v2515_v24  ;;  %v3112_v28 = vpop.f32.mrb[3].mxu0 }
0x14bd   : > { %2521 = vst.msk [vmem:[%s3640_s6 + $0x8] sm:$0xff] %vm2519_vm9, %v2516_v27 }
0x14be PF: > { %s4121_s13 = sld [smem:[#allocation13_spill]]  ;;  %s4122_s29 = sld [smem:[#allocation7_spill]] }
0x14bf   : > { %s4123_s30 = sld [smem:[#allocation8_spill]]  ;;  %s4124_s15 = sld [smem:[#allocation16_spill]] }
0x14c0   : > { %s4125_s16 = sld [smem:[#allocation11_spill]]  ;;  %s4126_s17 = sld [smem:[#allocation12_spill]] }
0x14c1   : > { %s4127_s18 = sld [smem:[#allocation14_spill]]  ;;  %s4128_s19 = sld [smem:[#allocation15_spill]] }
0x14c4   : > { %s28_s20 = sadd.s32 1, %s4121_s13  }
0x14c5   : > { %p25_p1 = scmp.ge.s32.totalorder %s28_s20, 14  }
0x14c7   :  { %27 = sbr.rel (!%p25_p1) target bundleno = 16 (0x10), region = 166 }
0x14ce   :  { %2581 = vsyncpa [#allocation5], 1 }
0x14cf   :  { %2583 = vsyncpa [#allocation5 + $0x1], 1 }

</bundles_post_ra>
